<compile_context>
chip_gen: v6e
topology: v6e:2x2x1
jax: 0.10.0
libtpu: 0.0.40
codegen_flags: <defaults>
</compile_context>

<pallas_src>
import functools

import jax
import jax.numpy as jnp
import numpy as np
from jax.experimental import pallas as pl
from jax.experimental.pallas import tpu as pltpu


# ----------------------------------------------------------------------------
# Pallas kernel: one fused KGNN-LS hop (mix neighbors + GCN combine).
# ----------------------------------------------------------------------------
def _mix_combine_kernel(self_ref, nv_ref, nr_ref, ue_ref, ex_ref,
                        seg_score_ref, seg_expand_ref, seg_agg_ref,
                        w_ref, b_ref, out_ref, *, act, use_expand):
    # self_ref    : (rt, D)        self entity vectors
    # nv_ref      : (rt, N*D)      neighbor entity vectors, lane-dense packed
    # nr_ref      : (rt, N*D)      neighbor relation vectors, lane-dense packed
    # ue_ref      : (bt, N*D)      user embeddings of this tile's batches,
    #                              pre-tiled N times along lanes
    # ex_ref      : (rt, bt)       constant 0/1 row-expansion matrix (or (1,1))
    # seg_score   : (N*D, N)       (1/D) * block-diag ones  -> mean over D
    # seg_expand  : (N, N*D)       block-diag ones          -> repeat over D
    # seg_agg     : (N*D, D)       (1/N) * tiled identity   -> mean over N
    # w_ref       : (D, D)         combiner weight (y = x @ W)
    # b_ref       : (1, D)         combiner bias
    f32 = jnp.float32

    ue = ue_ref[...].astype(f32)                                     # (bt, N*D)
    if use_expand:
        # Repeat each user row M times -> one user row per entity row of the
        # tile.  Constant matmul on the otherwise idle MXU (no HBM broadcast).
        ue = jnp.dot(ex_ref[...], ue, preferred_element_type=f32)    # (rt, N*D)

    # user-relation score: mean over D folded into seg_score -> (rt, N)
    nrp = nr_ref[...].astype(f32)
    score = jnp.dot(nrp * ue, seg_score_ref[...], preferred_element_type=f32)

    # softmax over the neighbor axis (EUP reciprocal instead of VALU divide)
    score = score - jnp.max(score, axis=-1, keepdims=True)
    e = jnp.exp(score)
    soft = e * pl.reciprocal(jnp.sum(e, axis=-1, keepdims=True), approx=True)

    # broadcast softmax weights back across the D lanes of every neighbor and
    # take the weighted mean over neighbors (1/N folded into seg_agg).
    w_soft = jnp.dot(soft, seg_expand_ref[...], preferred_element_type=f32)
    nvp = nv_ref[...].astype(f32)
    agg = jnp.dot(nvp * w_soft, seg_agg_ref[...], preferred_element_type=f32)

    # GCNCombiner ('sum'): act((self + agg) @ W + b)
    x = self_ref[...].astype(f32) + agg
    y = jnp.dot(x, w_ref[...], preferred_element_type=f32) + b_ref[...]
    y = jnp.maximum(y, 0.0) if act == "relu" else jnp.tanh(y)
    out_ref[...] = y.astype(out_ref.dtype)


# ----------------------------------------------------------------------------
# Host-side helpers.
# ----------------------------------------------------------------------------
@functools.lru_cache(maxsize=None)
def _segment_matrices(n_neighbor, dim):
    N, D = n_neighbor, dim
    eye_n = np.eye(N, dtype=np.float32)
    seg_score = np.kron(eye_n, np.ones((D, 1), np.float32)) / D      # (N*D, N)
    seg_expand = np.kron(eye_n, np.ones((1, D), np.float32))         # (N, N*D)
    seg_agg = np.tile(np.eye(D, dtype=np.float32), (N, 1)) / N       # (N*D, D)
    return seg_score, seg_expand, seg_agg


def _pick_batch_tile(B, M, max_rows):
    """Largest b_tile s.t. b_tile | B, the (b_tile*M)-row block and the
    (b_tile, N*D) user block have TPU-legal sublane dims, and b_tile*M stays
    around max_rows.  Tiles never require padding."""
    target = max(1, min(B, max(1, max_rows // max(M, 1))))
    for bt in range(target, 0, -1):
        if B % bt:
            continue
        rows_ok = ((bt * M) % 8 == 0) or (bt == B)
        user_ok = (bt % 8 == 0) or (bt == B)
        if rows_ok and user_ok:
            return bt
    # TODO(synk): for exotic (B, M) combos this falls back to a single tile of
    # all B*M rows; split along M instead if that ever exceeds the VMEM budget.
    return B


def mix_combine(self_v, neigh_v, neigh_r, user_tiled, w, b, act,
                *, n_neighbor, dim, max_rows=1024, out_dtype=jnp.float32):
    """One fused KGNN-LS hop over R = B*M flattened (batch, node) rows."""
    R, D = self_v.shape
    N = n_neighbor
    ND = N * D
    B = user_tiled.shape[0]
    M = R // B

    b_tile = _pick_batch_tile(B, M, max_rows)
    rt = b_tile * M                       # rows per grid step (divides R)
    grid = (R // rt,)
    use_expand = M > 1

    seg_score, seg_expand, seg_agg = (jnp.asarray(a)
                                      for a in _segment_matrices(N, D))
    if use_expand:
        expand = jnp.asarray(
            np.repeat(np.eye(b_tile, dtype=np.float32), M, axis=0))  # (rt, bt)
    else:
        expand = jnp.zeros((1, 1), jnp.float32)   # unused placeholder

    nbytes = lambda a: a.size * a.dtype.itemsize
    bytes_accessed = int(nbytes(self_v) + nbytes(neigh_v) + nbytes(neigh_r)
                         + nbytes(user_tiled)
                         + R * D * jnp.dtype(out_dtype).itemsize)
    flops = int(2 * R * (ND * (N + D) + D * D)
                + (2 * R * ND * b_tile if use_expand else 0)
                + 6 * R * ND)
    transcendentals = int(R * (N + D))

    kernel = functools.partial(_mix_combine_kernel, act=act,
                               use_expand=use_expand)
    return pl.pallas_call(
        kernel,
        out_shape=jax.ShapeDtypeStruct((R, D), out_dtype),
        grid_spec=pltpu.PrefetchScalarGridSpec(
            num_scalar_prefetch=0,
            grid=grid,
            in_specs=[
                pl.BlockSpec((rt, D), lambda i: (i, 0)),        # self
                pl.BlockSpec((rt, ND), lambda i: (i, 0)),       # neighbors (packed)
                pl.BlockSpec((rt, ND), lambda i: (i, 0)),       # relations (packed)
                pl.BlockSpec((b_tile, ND), lambda i: (i, 0)),   # user rows (tiled)
                pl.BlockSpec(expand.shape, lambda i: (0, 0)),   # row expansion
                pl.BlockSpec((ND, N), lambda i: (0, 0)),        # seg_score
                pl.BlockSpec((N, ND), lambda i: (0, 0)),        # seg_expand
                pl.BlockSpec((ND, D), lambda i: (0, 0)),        # seg_agg
                pl.BlockSpec((D, D), lambda i: (0, 0)),         # combiner W
                pl.BlockSpec((1, D), lambda i: (0, 0)),         # combiner b
            ],
            out_specs=pl.BlockSpec((rt, D), lambda i: (i, 0)),
        ),
        compiler_params=pltpu.CompilerParams(
            dimension_semantics=("parallel",)),
        cost_estimate=pl.CostEstimate(flops=flops,
                                      transcendentals=transcendentals,
                                      bytes_accessed=bytes_accessed),
    )(self_v, neigh_v, neigh_r, user_tiled, expand,
      seg_score, seg_expand, seg_agg, w, b.reshape(1, D))


# ----------------------------------------------------------------------------
# KGNNLSItemEncoder forward (host-side orchestration, kernels do the math).
# ----------------------------------------------------------------------------
def kgnnls_item_encoder(entities, relations, user_emb, ent_table, rel_table,
                        Ws, bs, *, n_iter, n_neighbor, dim, max_rows=1024):
    # Embedding gathers (glue).  Tables are read in bf16 to halve the HBM
    # traffic of the dominant first-iteration inputs; kernels upcast to f32.
    ent_bf = ent_table.astype(jnp.bfloat16)
    rel_bf = rel_table.astype(jnp.bfloat16)
    entity_vectors = [jnp.take(ent_bf, e, axis=0) for e in entities]
    relation_vectors = [jnp.take(rel_bf, r, axis=0) for r in relations]
    B = user_emb.shape[0]
    # Per-user row pre-tiled to N*D lanes (tiny: B x N*D).  The per-(B*M)-row
    # broadcast is never materialized in HBM.
    user_tiled = jnp.tile(user_emb.astype(jnp.float32), (1, n_neighbor))

    for i in range(n_iter):
        act = "tanh" if i == n_iter - 1 else "relu"
        nxt = []
        for hop in range(n_iter - i):
            M = entity_vectors[hop].shape[1]
            self_v = entity_vectors[hop].reshape(B * M, dim)
            nv = entity_vectors[hop + 1].reshape(B * M, n_neighbor * dim)
            nr = relation_vectors[hop].reshape(B * M, n_neighbor * dim)
            out = mix_combine(self_v, nv, nr, user_tiled, Ws[i], bs[i], act,
                              n_neighbor=n_neighbor, dim=dim, max_rows=max_rows)
            nxt.append(out.reshape(B, M, dim))
        entity_vectors = nxt
    return entity_vectors[0].reshape(-1, dim)


# Pure-JAX reference mirroring the PyTorch module (same bf16-quantized
# embedding inputs, f32 math), for verification.
def kgnnls_reference(entities, relations, user_emb, ent_table, rel_table,
                     Ws, bs, n_iter, n_neighbor, dim):
    ent_q = ent_table.astype(jnp.bfloat16).astype(jnp.float32)
    rel_q = rel_table.astype(jnp.bfloat16).astype(jnp.float32)
    ev = [ent_q[e] for e in entities]
    rv = [rel_q[r] for r in relations]
    B = user_emb.shape[0]
    for i in range(n_iter):
        actf = jnp.tanh if i == n_iter - 1 else (lambda x: jnp.maximum(x, 0.0))
        nxt = []
        for hop in range(n_iter - i):
            M = ev[hop].shape[1]
            nv = ev[hop + 1].reshape(B, M, n_neighbor, dim)
            nr = rv[hop].reshape(B, M, n_neighbor, dim)
            ue = user_emb.reshape(B, 1, 1, dim)
            score = jnp.mean(nr * ue, axis=-1)
            soft = jax.nn.softmax(score, axis=-1)[..., None]
            agg = jnp.mean(soft * nv, axis=-2)
            y = actf((ev[hop] + agg) @ Ws[i] + bs[i])
            nxt.append(y)
        ev = nxt
    return ev[0].reshape(-1, dim)


if __name__ == "__main__":
    # config: n_iter=2, embed_dim=32, neighbor_sample_size=8, aggregator='sum'
    n_iter, dim, n_neighbor = 2, 32, 8
    batch = 4
    n_entities, n_relations = 50, 10

    key = jax.random.PRNGKey(0)
    k_ent, k_rel, k_user, k_w, k_b, k_e, k_r = jax.random.split(key, 7)

    # deterministic parameters (synthetic init, no checkpoint)
    ent_table = jax.random.normal(k_ent, (n_entities, dim), jnp.float32) * 0.1
    rel_table = jax.random.normal(k_rel, (n_relations, dim), jnp.float32) * 0.1
    user_emb = jax.random.normal(k_user, (batch, dim), jnp.float32) * 0.1
    wkeys = jax.random.split(k_w, n_iter)
    bkeys = jax.random.split(k_b, n_iter)
    Ws = [jax.random.normal(wkeys[i], (dim, dim), jnp.float32) * 0.1
          for i in range(n_iter)]          # stored as (in, out): y = x @ W
    bs = [jax.random.normal(bkeys[i], (dim,), jnp.float32) * 0.1
          for i in range(n_iter)]

    # entities[hop]: (batch, n_neighbor^hop); relations[hop]: (batch, n_neighbor^(hop+1))
    ekeys = jax.random.split(k_e, n_iter + 1)
    rkeys = jax.random.split(k_r, n_iter)
    entities = [jax.random.randint(ekeys[h], (batch, n_neighbor ** h), 0, n_entities)
                for h in range(n_iter + 1)]
    relations = [jax.random.randint(rkeys[h], (batch, n_neighbor ** (h + 1)), 0, n_relations)
                 for h in range(n_iter)]

    encoder = jax.jit(functools.partial(
        kgnnls_item_encoder, n_iter=n_iter, n_neighbor=n_neighbor, dim=dim))
    out = encoder(entities, relations, user_emb, ent_table, rel_table, Ws, bs)
    out = jax.block_until_ready(out)

    ref = kgnnls_reference(entities, relations, user_emb,
                           ent_table, rel_table, Ws, bs,
                           n_iter, n_neighbor, dim)
    np.testing.assert_allclose(np.asarray(out, dtype=np.float32), np.asarray(ref),
                               rtol=1e-2, atol=1e-3)
    assert out.shape == (batch, dim)
    print("KERNEL_OK")
</pallas_src>

<mosaic_0001>
module attributes {stable_mosaic.version = 11 : i64} {
  func.func @_mix_combine_kernel(%arg0: i32, %arg1: memref<4x32xbf16, #tpu.memory_space<vmem>>, %arg2: memref<4x256xbf16, #tpu.memory_space<vmem>>, %arg3: memref<4x256xbf16, #tpu.memory_space<vmem>>, %arg4: memref<4x256xf32, #tpu.memory_space<vmem>>, %arg5: memref<1x1xf32, #tpu.memory_space<vmem>>, %arg6: memref<256x8xf32, #tpu.memory_space<vmem>>, %arg7: memref<8x256xf32, #tpu.memory_space<vmem>>, %arg8: memref<256x32xf32, #tpu.memory_space<vmem>>, %arg9: memref<32x32xf32, #tpu.memory_space<vmem>>, %arg10: memref<1x32xf32, #tpu.memory_space<vmem>>, %arg11: memref<4x32xf32, #tpu.memory_space<vmem>>) attributes {dimension_semantics = [#tpu.dimension_semantics<parallel>], iteration_bounds = array<i64: 1>, scalar_prefetch = 0 : i64, scratch_operands = 0 : i64, tpu.core_type = #tpu.core_type<tc>, window_params = [{transform_indices = @transform_0, window_bounds = array<i64: 4, 32>}, {transform_indices = @transform_1, window_bounds = array<i64: 4, 256>}, {transform_indices = @transform_2, window_bounds = array<i64: 4, 256>}, {transform_indices = @transform_3, window_bounds = array<i64: 4, 256>}, {pipeline_mode = #tpu.pipeline_mode<synchronous>, transform_indices = @transform_4, window_bounds = array<i64: 1, 1>}, {pipeline_mode = #tpu.pipeline_mode<synchronous>, transform_indices = @transform_5, window_bounds = array<i64: 256, 8>}, {pipeline_mode = #tpu.pipeline_mode<synchronous>, transform_indices = @transform_6, window_bounds = array<i64: 8, 256>}, {pipeline_mode = #tpu.pipeline_mode<synchronous>, transform_indices = @transform_7, window_bounds = array<i64: 256, 32>}, {pipeline_mode = #tpu.pipeline_mode<synchronous>, transform_indices = @transform_8, window_bounds = array<i64: 32, 32>}, {pipeline_mode = #tpu.pipeline_mode<synchronous>, transform_indices = @transform_9, window_bounds = array<i64: 1, 32>}, {transform_indices = @transform_10, window_bounds = array<i64: 4, 32>}]} {
    %c0 = arith.constant 0 : index
    %c0_0 = arith.constant 0 : index
    %0 = vector.load %arg4[%c0, %c0_0] : memref<4x256xf32, #tpu.memory_space<vmem>>, vector<4x256xf32>
    %c0_1 = arith.constant 0 : index
    %c0_2 = arith.constant 0 : index
    %1 = vector.load %arg3[%c0_1, %c0_2] : memref<4x256xbf16, #tpu.memory_space<vmem>>, vector<4x256xbf16>
    %2 = arith.extf %1 : vector<4x256xbf16> to vector<4x256xf32>
    %3 = arith.mulf %2, %0 : vector<4x256xf32>
    %c0_3 = arith.constant 0 : index
    %c0_4 = arith.constant 0 : index
    %4 = vector.load %arg6[%c0_3, %c0_4] : memref<256x8xf32, #tpu.memory_space<vmem>>, vector<256x8xf32>
    %cst = arith.constant dense<0.000000e+00> : vector<4x8xf32>
    %5 = tpu.matmul %3, %4, %cst {dimension_numbers = #tpu.dot_dimension_numbers<[1], [0], [0], [1], [0, 0, 1, 1], [], []>} : vector<4x256xf32>, vector<256x8xf32>, vector<4x8xf32> -> vector<4x8xf32>
    %cst_5 = arith.constant dense<0xFF800000> : vector<4xf32>
    %6 = vector.multi_reduction <maximumf>, %5, %cst_5 [1] : vector<4x8xf32> to vector<4xf32>
    %7 = vector.shape_cast %6 : vector<4xf32> to vector<4x1xf32>
    %8 = vector.broadcast %7 : vector<4x1xf32> to vector<4x8xf32>
    %9 = arith.subf %5, %8 : vector<4x8xf32>
    %10 = math.exp %9 : vector<4x8xf32>
    %cst_6 = arith.constant dense<0.000000e+00> : vector<4xf32>
    %11 = vector.multi_reduction <add>, %10, %cst_6 [1] : vector<4x8xf32> to vector<4xf32>
    %12 = vector.shape_cast %11 : vector<4xf32> to vector<4x1xf32>
    %13 = tpu.reciprocal %12 {approx = true} : vector<4x1xf32> -> vector<4x1xf32>
    %14 = vector.broadcast %13 : vector<4x1xf32> to vector<4x8xf32>
    %15 = arith.mulf %10, %14 : vector<4x8xf32>
    %c0_7 = arith.constant 0 : index
    %c0_8 = arith.constant 0 : index
    %16 = vector.load %arg7[%c0_7, %c0_8] : memref<8x256xf32, #tpu.memory_space<vmem>>, vector<8x256xf32>
    %cst_9 = arith.constant dense<0.000000e+00> : vector<4x256xf32>
    %17 = tpu.matmul %15, %16, %cst_9 {dimension_numbers = #tpu.dot_dimension_numbers<[1], [0], [0], [1], [0, 0, 1, 1], [], []>} : vector<4x8xf32>, vector<8x256xf32>, vector<4x256xf32> -> vector<4x256xf32>
    %c0_10 = arith.constant 0 : index
    %c0_11 = arith.constant 0 : index
    %18 = vector.load %arg2[%c0_10, %c0_11] : memref<4x256xbf16, #tpu.memory_space<vmem>>, vector<4x256xbf16>
    %19 = arith.extf %18 : vector<4x256xbf16> to vector<4x256xf32>
    %20 = arith.mulf %19, %17 : vector<4x256xf32>
    %c0_12 = arith.constant 0 : index
    %c0_13 = arith.constant 0 : index
    %21 = vector.load %arg8[%c0_12, %c0_13] : memref<256x32xf32, #tpu.memory_space<vmem>>, vector<256x32xf32>
    %cst_14 = arith.constant dense<0.000000e+00> : vector<4x32xf32>
    %22 = tpu.matmul %20, %21, %cst_14 {dimension_numbers = #tpu.dot_dimension_numbers<[1], [0], [0], [1], [0, 0, 1, 1], [], []>} : vector<4x256xf32>, vector<256x32xf32>, vector<4x32xf32> -> vector<4x32xf32>
    %c0_15 = arith.constant 0 : index
    %c0_16 = arith.constant 0 : index
    %23 = vector.load %arg1[%c0_15, %c0_16] : memref<4x32xbf16, #tpu.memory_space<vmem>>, vector<4x32xbf16>
    %24 = arith.extf %23 : vector<4x32xbf16> to vector<4x32xf32>
    %25 = arith.addf %24, %22 : vector<4x32xf32>
    %c0_17 = arith.constant 0 : index
    %c0_18 = arith.constant 0 : index
    %26 = vector.load %arg9[%c0_17, %c0_18] : memref<32x32xf32, #tpu.memory_space<vmem>>, vector<32x32xf32>
    %cst_19 = arith.constant dense<0.000000e+00> : vector<4x32xf32>
    %27 = tpu.matmul %25, %26, %cst_19 {dimension_numbers = #tpu.dot_dimension_numbers<[1], [0], [0], [1], [0, 0, 1, 1], [], []>} : vector<4x32xf32>, vector<32x32xf32>, vector<4x32xf32> -> vector<4x32xf32>
    %c0_20 = arith.constant 0 : index
    %c0_21 = arith.constant 0 : index
    %28 = vector.load %arg10[%c0_20, %c0_21] : memref<1x32xf32, #tpu.memory_space<vmem>>, vector<1x32xf32>
    %29 = vector.broadcast %28 : vector<1x32xf32> to vector<4x32xf32>
    %30 = arith.addf %27, %29 : vector<4x32xf32>
    %cst_22 = arith.constant 0.000000e+00 : f32
    %31 = vector.broadcast %cst_22 : f32 to vector<4x32xf32>
    %32 = arith.maximumf %30, %31 : vector<4x32xf32>
    %c0_23 = arith.constant 0 : index
    %c0_24 = arith.constant 0 : index
    %33 = vector.load %arg11[%c0_23, %c0_24] : memref<4x32xf32, #tpu.memory_space<vmem>>, vector<4x32xf32>
    tpu.vector_store %arg11[%c0_23, %c0_24], %32 {strides = array<i32>} : memref<4x32xf32, #tpu.memory_space<vmem>>, vector<4x32xf32>,
    return
  }
  func.func @transform_0(%arg0: i32) -> (i32, i32) {
    %c0_i32 = arith.constant 0 : i32
    %c0_i32_0 = arith.constant 0 : i32
    return %arg0, %c0_i32 : i32, i32
  }
  func.func @transform_1(%arg0: i32) -> (i32, i32) {
    %c0_i32 = arith.constant 0 : i32
    %c0_i32_0 = arith.constant 0 : i32
    return %arg0, %c0_i32 : i32, i32
  }
  func.func @transform_2(%arg0: i32) -> (i32, i32) {
    %c0_i32 = arith.constant 0 : i32
    %c0_i32_0 = arith.constant 0 : i32
    return %arg0, %c0_i32 : i32, i32
  }
  func.func @transform_3(%arg0: i32) -> (i32, i32) {
    %c0_i32 = arith.constant 0 : i32
    %c0_i32_0 = arith.constant 0 : i32
    return %arg0, %c0_i32 : i32, i32
  }
  func.func @transform_4(%arg0: i32) -> (i32, i32) {
    %c0_i32 = arith.constant 0 : i32
    %c0_i32_0 = arith.constant 0 : i32
    %c0_i32_1 = arith.constant 0 : i32
    return %c0_i32, %c0_i32_0 : i32, i32
  }
  func.func @transform_5(%arg0: i32) -> (i32, i32) {
    %c0_i32 = arith.constant 0 : i32
    %c0_i32_0 = arith.constant 0 : i32
    %c0_i32_1 = arith.constant 0 : i32
    return %c0_i32, %c0_i32_0 : i32, i32
  }
  func.func @transform_6(%arg0: i32) -> (i32, i32) {
    %c0_i32 = arith.constant 0 : i32
    %c0_i32_0 = arith.constant 0 : i32
    %c0_i32_1 = arith.constant 0 : i32
    return %c0_i32, %c0_i32_0 : i32, i32
  }
  func.func @transform_7(%arg0: i32) -> (i32, i32) {
    %c0_i32 = arith.constant 0 : i32
    %c0_i32_0 = arith.constant 0 : i32
    %c0_i32_1 = arith.constant 0 : i32
    return %c0_i32, %c0_i32_0 : i32, i32
  }
  func.func @transform_8(%arg0: i32) -> (i32, i32) {
    %c0_i32 = arith.constant 0 : i32
    %c0_i32_0 = arith.constant 0 : i32
    %c0_i32_1 = arith.constant 0 : i32
    return %c0_i32, %c0_i32_0 : i32, i32
  }
  func.func @transform_9(%arg0: i32) -> (i32, i32) {
    %c0_i32 = arith.constant 0 : i32
    %c0_i32_0 = arith.constant 0 : i32
    %c0_i32_1 = arith.constant 0 : i32
    return %c0_i32, %c0_i32_0 : i32, i32
  }
  func.func @transform_10(%arg0: i32) -> (i32, i32) {
    %c0_i32 = arith.constant 0 : i32
    %c0_i32_0 = arith.constant 0 : i32
    return %arg0, %c0_i32 : i32, i32
  }
}

module attributes {stable_mosaic.version = 11 : i64} {
  func.func @_mix_combine_kernel(%arg0: i32, %arg1: memref<32x32xbf16, #tpu.memory_space<vmem>>, %arg2: memref<32x256xbf16, #tpu.memory_space<vmem>>, %arg3: memref<32x256xbf16, #tpu.memory_space<vmem>>, %arg4: memref<4x256xf32, #tpu.memory_space<vmem>>, %arg5: memref<32x4xf32, #tpu.memory_space<vmem>>, %arg6: memref<256x8xf32, #tpu.memory_space<vmem>>, %arg7: memref<8x256xf32, #tpu.memory_space<vmem>>, %arg8: memref<256x32xf32, #tpu.memory_space<vmem>>, %arg9: memref<32x32xf32, #tpu.memory_space<vmem>>, %arg10: memref<1x32xf32, #tpu.memory_space<vmem>>, %arg11: memref<32x32xf32, #tpu.memory_space<vmem>>) attributes {dimension_semantics = [#tpu.dimension_semantics<parallel>], iteration_bounds = array<i64: 1>, scalar_prefetch = 0 : i64, scratch_operands = 0 : i64, tpu.core_type = #tpu.core_type<tc>, window_params = [{transform_indices = @transform_0, window_bounds = array<i64: 32, 32>}, {transform_indices = @transform_1, window_bounds = array<i64: 32, 256>}, {transform_indices = @transform_2, window_bounds = array<i64: 32, 256>}, {transform_indices = @transform_3, window_bounds = array<i64: 4, 256>}, {pipeline_mode = #tpu.pipeline_mode<synchronous>, transform_indices = @transform_4, window_bounds = array<i64: 32, 4>}, {pipeline_mode = #tpu.pipeline_mode<synchronous>, transform_indices = @transform_5, window_bounds = array<i64: 256, 8>}, {pipeline_mode = #tpu.pipeline_mode<synchronous>, transform_indices = @transform_6, window_bounds = array<i64: 8, 256>}, {pipeline_mode = #tpu.pipeline_mode<synchronous>, transform_indices = @transform_7, window_bounds = array<i64: 256, 32>}, {pipeline_mode = #tpu.pipeline_mode<synchronous>, transform_indices = @transform_8, window_bounds = array<i64: 32, 32>}, {pipeline_mode = #tpu.pipeline_mode<synchronous>, transform_indices = @transform_9, window_bounds = array<i64: 1, 32>}, {transform_indices = @transform_10, window_bounds = array<i64: 32, 32>}]} {
    %c0 = arith.constant 0 : index
    %c0_0 = arith.constant 0 : index
    %0 = vector.load %arg4[%c0, %c0_0] : memref<4x256xf32, #tpu.memory_space<vmem>>, vector<4x256xf32>
    %c0_1 = arith.constant 0 : index
    %c0_2 = arith.constant 0 : index
    %1 = vector.load %arg5[%c0_1, %c0_2] : memref<32x4xf32, #tpu.memory_space<vmem>>, vector<32x4xf32>
    %cst = arith.constant dense<0.000000e+00> : vector<32x256xf32>
    %2 = tpu.matmul %1, %0, %cst {dimension_numbers = #tpu.dot_dimension_numbers<[1], [0], [0], [1], [0, 0, 1, 1], [], []>} : vector<32x4xf32>, vector<4x256xf32>, vector<32x256xf32> -> vector<32x256xf32>
    %c0_3 = arith.constant 0 : index
    %c0_4 = arith.constant 0 : index
    %3 = vector.load %arg3[%c0_3, %c0_4] : memref<32x256xbf16, #tpu.memory_space<vmem>>, vector<32x256xbf16>
    %4 = arith.extf %3 : vector<32x256xbf16> to vector<32x256xf32>
    %5 = arith.mulf %4, %2 : vector<32x256xf32>
    %c0_5 = arith.constant 0 : index
    %c0_6 = arith.constant 0 : index
    %6 = vector.load %arg6[%c0_5, %c0_6] : memref<256x8xf32, #tpu.memory_space<vmem>>, vector<256x8xf32>
    %cst_7 = arith.constant dense<0.000000e+00> : vector<32x8xf32>
    %7 = tpu.matmul %5, %6, %cst_7 {dimension_numbers = #tpu.dot_dimension_numbers<[1], [0], [0], [1], [0, 0, 1, 1], [], []>} : vector<32x256xf32>, vector<256x8xf32>, vector<32x8xf32> -> vector<32x8xf32>
    %cst_8 = arith.constant dense<0xFF800000> : vector<32xf32>
    %8 = vector.multi_reduction <maximumf>, %7, %cst_8 [1] : vector<32x8xf32> to vector<32xf32>
    %9 = vector.shape_cast %8 : vector<32xf32> to vector<32x1xf32>
    %10 = vector.broadcast %9 : vector<32x1xf32> to vector<32x8xf32>
    %11 = arith.subf %7, %10 : vector<32x8xf32>
    %12 = math.exp %11 : vector<32x8xf32>
    %cst_9 = arith.constant dense<0.000000e+00> : vector<32xf32>
    %13 = vector.multi_reduction <add>, %12, %cst_9 [1] : vector<32x8xf32> to vector<32xf32>
    %14 = vector.shape_cast %13 : vector<32xf32> to vector<32x1xf32>
    %15 = tpu.reciprocal %14 {approx = true} : vector<32x1xf32> -> vector<32x1xf32>
    %16 = vector.broadcast %15 : vector<32x1xf32> to vector<32x8xf32>
    %17 = arith.mulf %12, %16 : vector<32x8xf32>
    %c0_10 = arith.constant 0 : index
    %c0_11 = arith.constant 0 : index
    %18 = vector.load %arg7[%c0_10, %c0_11] : memref<8x256xf32, #tpu.memory_space<vmem>>, vector<8x256xf32>
    %cst_12 = arith.constant dense<0.000000e+00> : vector<32x256xf32>
    %19 = tpu.matmul %17, %18, %cst_12 {dimension_numbers = #tpu.dot_dimension_numbers<[1], [0], [0], [1], [0, 0, 1, 1], [], []>} : vector<32x8xf32>, vector<8x256xf32>, vector<32x256xf32> -> vector<32x256xf32>
    %c0_13 = arith.constant 0 : index
    %c0_14 = arith.constant 0 : index
    %20 = vector.load %arg2[%c0_13, %c0_14] : memref<32x256xbf16, #tpu.memory_space<vmem>>, vector<32x256xbf16>
    %21 = arith.extf %20 : vector<32x256xbf16> to vector<32x256xf32>
    %22 = arith.mulf %21, %19 : vector<32x256xf32>
    %c0_15 = arith.constant 0 : index
    %c0_16 = arith.constant 0 : index
    %23 = vector.load %arg8[%c0_15, %c0_16] : memref<256x32xf32, #tpu.memory_space<vmem>>, vector<256x32xf32>
    %cst_17 = arith.constant dense<0.000000e+00> : vector<32x32xf32>
    %24 = tpu.matmul %22, %23, %cst_17 {dimension_numbers = #tpu.dot_dimension_numbers<[1], [0], [0], [1], [0, 0, 1, 1], [], []>} : vector<32x256xf32>, vector<256x32xf32>, vector<32x32xf32> -> vector<32x32xf32>
    %c0_18 = arith.constant 0 : index
    %c0_19 = arith.constant 0 : index
    %25 = vector.load %arg1[%c0_18, %c0_19] : memref<32x32xbf16, #tpu.memory_space<vmem>>, vector<32x32xbf16>
    %26 = arith.extf %25 : vector<32x32xbf16> to vector<32x32xf32>
    %27 = arith.addf %26, %24 : vector<32x32xf32>
    %c0_20 = arith.constant 0 : index
    %c0_21 = arith.constant 0 : index
    %28 = vector.load %arg9[%c0_20, %c0_21] : memref<32x32xf32, #tpu.memory_space<vmem>>, vector<32x32xf32>
    %cst_22 = arith.constant dense<0.000000e+00> : vector<32x32xf32>
    %29 = tpu.matmul %27, %28, %cst_22 {dimension_numbers = #tpu.dot_dimension_numbers<[1], [0], [0], [1], [0, 0, 1, 1], [], []>} : vector<32x32xf32>, vector<32x32xf32>, vector<32x32xf32> -> vector<32x32xf32>
    %c0_23 = arith.constant 0 : index
    %c0_24 = arith.constant 0 : index
    %30 = vector.load %arg10[%c0_23, %c0_24] : memref<1x32xf32, #tpu.memory_space<vmem>>, vector<1x32xf32>
    %31 = vector.broadcast %30 : vector<1x32xf32> to vector<32x32xf32>
    %32 = arith.addf %29, %31 : vector<32x32xf32>
    %cst_25 = arith.constant 0.000000e+00 : f32
    %33 = vector.broadcast %cst_25 : f32 to vector<32x32xf32>
    %34 = arith.maximumf %32, %33 : vector<32x32xf32>
    %c0_26 = arith.constant 0 : index
    %c0_27 = arith.constant 0 : index
    %35 = vector.load %arg11[%c0_26, %c0_27] : memref<32x32xf32, #tpu.memory_space<vmem>>, vector<32x32xf32>
    tpu.vector_store %arg11[%c0_26, %c0_27], %34 {strides = array<i32>} : memref<32x32xf32, #tpu.memory_space<vmem>>, vector<32x32xf32>,
    return
  }
  func.func @transform_0(%arg0: i32) -> (i32, i32) {
    %c0_i32 = arith.constant 0 : i32
    %c0_i32_0 = arith.constant 0 : i32
    return %arg0, %c0_i32 : i32, i32
  }
  func.func @transform_1(%arg0: i32) -> (i32, i32) {
    %c0_i32 = arith.constant 0 : i32
    %c0_i32_0 = arith.constant 0 : i32
    return %arg0, %c0_i32 : i32, i32
  }
  func.func @transform_2(%arg0: i32) -> (i32, i32) {
    %c0_i32 = arith.constant 0 : i32
    %c0_i32_0 = arith.constant 0 : i32
    return %arg0, %c0_i32 : i32, i32
  }
  func.func @transform_3(%arg0: i32) -> (i32, i32) {
    %c0_i32 = arith.constant 0 : i32
    %c0_i32_0 = arith.constant 0 : i32
    return %arg0, %c0_i32 : i32, i32
  }
  func.func @transform_4(%arg0: i32) -> (i32, i32) {
    %c0_i32 = arith.constant 0 : i32
    %c0_i32_0 = arith.constant 0 : i32
    %c0_i32_1 = arith.constant 0 : i32
    return %c0_i32, %c0_i32_0 : i32, i32
  }
  func.func @transform_5(%arg0: i32) -> (i32, i32) {
    %c0_i32 = arith.constant 0 : i32
    %c0_i32_0 = arith.constant 0 : i32
    %c0_i32_1 = arith.constant 0 : i32
    return %c0_i32, %c0_i32_0 : i32, i32
  }
  func.func @transform_6(%arg0: i32) -> (i32, i32) {
    %c0_i32 = arith.constant 0 : i32
    %c0_i32_0 = arith.constant 0 : i32
    %c0_i32_1 = arith.constant 0 : i32
    return %c0_i32, %c0_i32_0 : i32, i32
  }
  func.func @transform_7(%arg0: i32) -> (i32, i32) {
    %c0_i32 = arith.constant 0 : i32
    %c0_i32_0 = arith.constant 0 : i32
    %c0_i32_1 = arith.constant 0 : i32
    return %c0_i32, %c0_i32_0 : i32, i32
  }
  func.func @transform_8(%arg0: i32) -> (i32, i32) {
    %c0_i32 = arith.constant 0 : i32
    %c0_i32_0 = arith.constant 0 : i32
    %c0_i32_1 = arith.constant 0 : i32
    return %c0_i32, %c0_i32_0 : i32, i32
  }
  func.func @transform_9(%arg0: i32) -> (i32, i32) {
    %c0_i32 = arith.constant 0 : i32
    %c0_i32_0 = arith.constant 0 : i32
    %c0_i32_1 = arith.constant 0 : i32
    return %c0_i32, %c0_i32_0 : i32, i32
  }
  func.func @transform_10(%arg0: i32) -> (i32, i32) {
    %c0_i32 = arith.constant 0 : i32
    %c0_i32_0 = arith.constant 0 : i32
    return %arg0, %c0_i32 : i32, i32
  }
}

module attributes {stable_mosaic.version = 11 : i64} {
  func.func @_mix_combine_kernel(%arg0: i32, %arg1: memref<4x32xf32, #tpu.memory_space<vmem>>, %arg2: memref<4x256xf32, #tpu.memory_space<vmem>>, %arg3: memref<4x256xbf16, #tpu.memory_space<vmem>>, %arg4: memref<4x256xf32, #tpu.memory_space<vmem>>, %arg5: memref<1x1xf32, #tpu.memory_space<vmem>>, %arg6: memref<256x8xf32, #tpu.memory_space<vmem>>, %arg7: memref<8x256xf32, #tpu.memory_space<vmem>>, %arg8: memref<256x32xf32, #tpu.memory_space<vmem>>, %arg9: memref<32x32xf32, #tpu.memory_space<vmem>>, %arg10: memref<1x32xf32, #tpu.memory_space<vmem>>, %arg11: memref<4x32xf32, #tpu.memory_space<vmem>>) attributes {dimension_semantics = [#tpu.dimension_semantics<parallel>], iteration_bounds = array<i64: 1>, scalar_prefetch = 0 : i64, scratch_operands = 0 : i64, tpu.core_type = #tpu.core_type<tc>, window_params = [{transform_indices = @transform_0, window_bounds = array<i64: 4, 32>}, {transform_indices = @transform_1, window_bounds = array<i64: 4, 256>}, {transform_indices = @transform_2, window_bounds = array<i64: 4, 256>}, {transform_indices = @transform_3, window_bounds = array<i64: 4, 256>}, {pipeline_mode = #tpu.pipeline_mode<synchronous>, transform_indices = @transform_4, window_bounds = array<i64: 1, 1>}, {pipeline_mode = #tpu.pipeline_mode<synchronous>, transform_indices = @transform_5, window_bounds = array<i64: 256, 8>}, {pipeline_mode = #tpu.pipeline_mode<synchronous>, transform_indices = @transform_6, window_bounds = array<i64: 8, 256>}, {pipeline_mode = #tpu.pipeline_mode<synchronous>, transform_indices = @transform_7, window_bounds = array<i64: 256, 32>}, {pipeline_mode = #tpu.pipeline_mode<synchronous>, transform_indices = @transform_8, window_bounds = array<i64: 32, 32>}, {pipeline_mode = #tpu.pipeline_mode<synchronous>, transform_indices = @transform_9, window_bounds = array<i64: 1, 32>}, {transform_indices = @transform_10, window_bounds = array<i64: 4, 32>}]} {
    %c0 = arith.constant 0 : index
    %c0_0 = arith.constant 0 : index
    %0 = vector.load %arg4[%c0, %c0_0] : memref<4x256xf32, #tpu.memory_space<vmem>>, vector<4x256xf32>
    %c0_1 = arith.constant 0 : index
    %c0_2 = arith.constant 0 : index
    %1 = vector.load %arg3[%c0_1, %c0_2] : memref<4x256xbf16, #tpu.memory_space<vmem>>, vector<4x256xbf16>
    %2 = arith.extf %1 : vector<4x256xbf16> to vector<4x256xf32>
    %3 = arith.mulf %2, %0 : vector<4x256xf32>
    %c0_3 = arith.constant 0 : index
    %c0_4 = arith.constant 0 : index
    %4 = vector.load %arg6[%c0_3, %c0_4] : memref<256x8xf32, #tpu.memory_space<vmem>>, vector<256x8xf32>
    %cst = arith.constant dense<0.000000e+00> : vector<4x8xf32>
    %5 = tpu.matmul %3, %4, %cst {dimension_numbers = #tpu.dot_dimension_numbers<[1], [0], [0], [1], [0, 0, 1, 1], [], []>} : vector<4x256xf32>, vector<256x8xf32>, vector<4x8xf32> -> vector<4x8xf32>
    %cst_5 = arith.constant dense<0xFF800000> : vector<4xf32>
    %6 = vector.multi_reduction <maximumf>, %5, %cst_5 [1] : vector<4x8xf32> to vector<4xf32>
    %7 = vector.shape_cast %6 : vector<4xf32> to vector<4x1xf32>
    %8 = vector.broadcast %7 : vector<4x1xf32> to vector<4x8xf32>
    %9 = arith.subf %5, %8 : vector<4x8xf32>
    %10 = math.exp %9 : vector<4x8xf32>
    %cst_6 = arith.constant dense<0.000000e+00> : vector<4xf32>
    %11 = vector.multi_reduction <add>, %10, %cst_6 [1] : vector<4x8xf32> to vector<4xf32>
    %12 = vector.shape_cast %11 : vector<4xf32> to vector<4x1xf32>
    %13 = tpu.reciprocal %12 {approx = true} : vector<4x1xf32> -> vector<4x1xf32>
    %14 = vector.broadcast %13 : vector<4x1xf32> to vector<4x8xf32>
    %15 = arith.mulf %10, %14 : vector<4x8xf32>
    %c0_7 = arith.constant 0 : index
    %c0_8 = arith.constant 0 : index
    %16 = vector.load %arg7[%c0_7, %c0_8] : memref<8x256xf32, #tpu.memory_space<vmem>>, vector<8x256xf32>
    %cst_9 = arith.constant dense<0.000000e+00> : vector<4x256xf32>
    %17 = tpu.matmul %15, %16, %cst_9 {dimension_numbers = #tpu.dot_dimension_numbers<[1], [0], [0], [1], [0, 0, 1, 1], [], []>} : vector<4x8xf32>, vector<8x256xf32>, vector<4x256xf32> -> vector<4x256xf32>
    %c0_10 = arith.constant 0 : index
    %c0_11 = arith.constant 0 : index
    %18 = vector.load %arg2[%c0_10, %c0_11] : memref<4x256xf32, #tpu.memory_space<vmem>>, vector<4x256xf32>
    %19 = arith.mulf %18, %17 : vector<4x256xf32>
    %c0_12 = arith.constant 0 : index
    %c0_13 = arith.constant 0 : index
    %20 = vector.load %arg8[%c0_12, %c0_13] : memref<256x32xf32, #tpu.memory_space<vmem>>, vector<256x32xf32>
    %cst_14 = arith.constant dense<0.000000e+00> : vector<4x32xf32>
    %21 = tpu.matmul %19, %20, %cst_14 {dimension_numbers = #tpu.dot_dimension_numbers<[1], [0], [0], [1], [0, 0, 1, 1], [], []>} : vector<4x256xf32>, vector<256x32xf32>, vector<4x32xf32> -> vector<4x32xf32>
    %c0_15 = arith.constant 0 : index
    %c0_16 = arith.constant 0 : index
    %22 = vector.load %arg1[%c0_15, %c0_16] : memref<4x32xf32, #tpu.memory_space<vmem>>, vector<4x32xf32>
    %23 = arith.addf %22, %21 : vector<4x32xf32>
    %c0_17 = arith.constant 0 : index
    %c0_18 = arith.constant 0 : index
    %24 = vector.load %arg9[%c0_17, %c0_18] : memref<32x32xf32, #tpu.memory_space<vmem>>, vector<32x32xf32>
    %cst_19 = arith.constant dense<0.000000e+00> : vector<4x32xf32>
    %25 = tpu.matmul %23, %24, %cst_19 {dimension_numbers = #tpu.dot_dimension_numbers<[1], [0], [0], [1], [0, 0, 1, 1], [], []>} : vector<4x32xf32>, vector<32x32xf32>, vector<4x32xf32> -> vector<4x32xf32>
    %c0_20 = arith.constant 0 : index
    %c0_21 = arith.constant 0 : index
    %26 = vector.load %arg10[%c0_20, %c0_21] : memref<1x32xf32, #tpu.memory_space<vmem>>, vector<1x32xf32>
    %27 = vector.broadcast %26 : vector<1x32xf32> to vector<4x32xf32>
    %28 = arith.addf %25, %27 : vector<4x32xf32>
    %29 = math.tanh %28 : vector<4x32xf32>
    %c0_22 = arith.constant 0 : index
    %c0_23 = arith.constant 0 : index
    %30 = vector.load %arg11[%c0_22, %c0_23] : memref<4x32xf32, #tpu.memory_space<vmem>>, vector<4x32xf32>
    tpu.vector_store %arg11[%c0_22, %c0_23], %29 {strides = array<i32>} : memref<4x32xf32, #tpu.memory_space<vmem>>, vector<4x32xf32>,
    return
  }
  func.func @transform_0(%arg0: i32) -> (i32, i32) {
    %c0_i32 = arith.constant 0 : i32
    %c0_i32_0 = arith.constant 0 : i32
    return %arg0, %c0_i32 : i32, i32
  }
  func.func @transform_1(%arg0: i32) -> (i32, i32) {
    %c0_i32 = arith.constant 0 : i32
    %c0_i32_0 = arith.constant 0 : i32
    return %arg0, %c0_i32 : i32, i32
  }
  func.func @transform_2(%arg0: i32) -> (i32, i32) {
    %c0_i32 = arith.constant 0 : i32
    %c0_i32_0 = arith.constant 0 : i32
    return %arg0, %c0_i32 : i32, i32
  }
  func.func @transform_3(%arg0: i32) -> (i32, i32) {
    %c0_i32 = arith.constant 0 : i32
    %c0_i32_0 = arith.constant 0 : i32
    return %arg0, %c0_i32 : i32, i32
  }
  func.func @transform_4(%arg0: i32) -> (i32, i32) {
    %c0_i32 = arith.constant 0 : i32
    %c0_i32_0 = arith.constant 0 : i32
    %c0_i32_1 = arith.constant 0 : i32
    return %c0_i32, %c0_i32_0 : i32, i32
  }
  func.func @transform_5(%arg0: i32) -> (i32, i32) {
    %c0_i32 = arith.constant 0 : i32
    %c0_i32_0 = arith.constant 0 : i32
    %c0_i32_1 = arith.constant 0 : i32
    return %c0_i32, %c0_i32_0 : i32, i32
  }
  func.func @transform_6(%arg0: i32) -> (i32, i32) {
    %c0_i32 = arith.constant 0 : i32
    %c0_i32_0 = arith.constant 0 : i32
    %c0_i32_1 = arith.constant 0 : i32
    return %c0_i32, %c0_i32_0 : i32, i32
  }
  func.func @transform_7(%arg0: i32) -> (i32, i32) {
    %c0_i32 = arith.constant 0 : i32
    %c0_i32_0 = arith.constant 0 : i32
    %c0_i32_1 = arith.constant 0 : i32
    return %c0_i32, %c0_i32_0 : i32, i32
  }
  func.func @transform_8(%arg0: i32) -> (i32, i32) {
    %c0_i32 = arith.constant 0 : i32
    %c0_i32_0 = arith.constant 0 : i32
    %c0_i32_1 = arith.constant 0 : i32
    return %c0_i32, %c0_i32_0 : i32, i32
  }
  func.func @transform_9(%arg0: i32) -> (i32, i32) {
    %c0_i32 = arith.constant 0 : i32
    %c0_i32_0 = arith.constant 0 : i32
    %c0_i32_1 = arith.constant 0 : i32
    return %c0_i32, %c0_i32_0 : i32, i32
  }
  func.func @transform_10(%arg0: i32) -> (i32, i32) {
    %c0_i32 = arith.constant 0 : i32
    %c0_i32_0 = arith.constant 0 : i32
    return %arg0, %c0_i32 : i32, i32
  }
}

</mosaic_0001>

<bundles_post_ra>
// kernel: tile.9
= control target key start
LH: loop header
LB: loop body
LE: loop exit
PB: predicated region body
PF: predicated region fallthrough
CT: control target
= control target key end

     0   :  { %vm15_vm0 = vcmask 1047556   ;;  %s71_s16 = smov 96   ;;  %vm3_vm1 = vcmask 261120   ;;  %s73_s21 = smov 64   ;;  %vm19_vm2 = vcmask 1048320   ;;  %vm31_vm3 = vcmask 785920   ;;  %s111_s0 = inlined_call_operand.vmem [shape: f32[4,8,32], index: 0, kind: input, shape index: {}]   ;;  %s112_s1 = inlined_call_operand.vmem [shape: f32[4,256], index: 1, kind: output, shape index: {}]  }
   0x1   :  { %v61_v0 = vld [vmem:[%s111_s0 + $0x3] ss:$8 sm:$0xf]   ;;  %v62_v1 = vld [vmem:[%s111_s0 - $0x19] ss:$8 sm:$0xf0]  }
   0x2   :  { %v63_v2 = vld [vmem:[%s111_s0 + $0x2] ss:$8 sm:$0xf]   ;;  %v16_v3 = vsel %vm15_vm0, %v62_v1, %v61_v0  ;;  %v64_v4 = vld [vmem:[%s111_s0 - $0x1a] ss:$8 sm:$0xf0]  }
   0x3   :  { %v65_v5 = vld [vmem:[%s111_s0 + $0x1] ss:$8 sm:$0xf]   ;;  %17 = vrot.lane.b32.xlu0 %v16_v3, %s71_s16  ;;  %v66_v6 = vld [vmem:[%s111_s0 - $0x1b] ss:$8 sm:$0xf0]   ;;  %v28_v7 = vsel %vm15_vm0, %v64_v4, %v63_v2 }
   0x4   :  { %v40_v8 = vsel %vm15_vm0, %v66_v6, %v65_v5  ;;  %v2_v9 = vld [vmem:[%s111_s0] ss:$4 sm:$0xff]   ;;  %s72_s0 = smov 32   ;;  %vm43_vm4 = vcmask 523520  }
   0x5   :  { %41 = vrot.lane.b32.xlu1 %v40_v8, %s72_s0  ;;  %4 = vst.msk [vmem:[#allocation0] ss:$8 sm:$0x3] %vm3_vm1, %v2_v9   ;;  %6 = vst.msk [vmem:[#allocation0 - $0xf] ss:$8 sm:$0xc] %vm3_vm1, %v2_v9  }
   0x6   :  { %8 = vst.msk [vmem:[#allocation0 - $0x1e] ss:$8 sm:$0x30] %vm3_vm1, %v2_v9   ;;  %10 = vst.msk [vmem:[#allocation0 - $0x2d] ss:$8 sm:$0xc0] %vm3_vm1, %v2_v9  }
   0x7   :  { %29 = vrot.lane.b32.xlu0 %v28_v7, %s73_s21 }
  0x75   :  { %v18_v10 = vpop.permute.xlu0 %17  }
  0x76   :  { %20 = vst.msk [vmem:[#allocation0] sm:$0xf] %vm19_vm2, %v18_v10   ;;  %22 = vst.msk [vmem:[#allocation0 + $0x4] sm:$0xf0] %vm19_vm2, %v18_v10  }
  0x77   :  { %v42_v11 = vpop.permute.xlu1 %41  }
  0x79   :  { %v30_v12 = vpop.permute.xlu0 %29  }
  0x7a   :  { %32 = vst.msk [vmem:[#allocation0] sm:$0xf] %vm31_vm3, %v30_v12   ;;  %34 = vst.msk [vmem:[#allocation0 + $0x4] sm:$0xf0] %vm31_vm3, %v30_v12  }
  0x7b   :  { %44 = vst.msk [vmem:[#allocation0] sm:$0xf] %vm43_vm4, %v42_v11   ;;  %46 = vst.msk [vmem:[#allocation0 + $0x4] sm:$0xf0] %vm43_vm4, %v42_v11  }
  0x82   :  { %v51_v13 = vld [vmem:[#allocation0] sm:$0xf]  ;;  %v56_v14 = vld [vmem:[#allocation0 + $0x8] sm:$0xf] }
  0x83   :  { %54 = vst [vmem:[%s112_s1] sm:$0xf] %v51_v13  ;;  %67 = vst [vmem:[%s112_s1 + $0x4] sm:$0xf] %v56_v14 }

// kernel: kgnnls_item_encoder.3
= control target key start
LH: loop header
LB: loop body
LE: loop exit
PB: predicated region body
PF: predicated region fallthrough
CT: control target
= control target key end

     0   :  { %vm146_vm0 = vcmask 60416   ;;  %v537_v48 = vmov 0.0   ;;  %vm160_vm1 = vcmask 64512   ;;  %vm538_vm2 = vmmov 0   ;;  %s828_s4 = inlined_call_operand.<no memory space> [shape: f32[1,1], index: 4, kind: input, shape index: {}]   ;;  %s829_s5 = inlined_call_operand.vmem [shape: f32[256,8], index: 5, kind: input, shape index: {}]   ;;  %s830_s2 = inlined_call_operand.vmem [shape: bf16[4,256], index: 2, kind: input, shape index: {}]   ;;  %s831_s3 = inlined_call_operand.vmem [shape: f32[4,256], index: 3, kind: input, shape index: {}]   ;;  %s832_s6 = inlined_call_operand.vmem [shape: f32[8,256], index: 6, kind: input, shape index: {}]   ;;  %s833_s7 = inlined_call_operand.vmem [shape: f32[256,32], index: 7, kind: input, shape index: {}]   ;;  %s834_s1 = inlined_call_operand.vmem [shape: bf16[4,256], index: 1, kind: input, shape index: {}]   ;;  %s835_s8 = inlined_call_operand.vmem [shape: f32[32,32], index: 8, kind: input, shape index: {}]   ;;  %s836_s0 = inlined_call_operand.vmem [shape: bf16[4,32], index: 0, kind: input, shape index: {}]   ;;  %s837_s9 = inlined_call_operand.vmem [shape: f32[1,32], index: 9, kind: input, shape index: {}]   ;;  %s838_s10 = inlined_call_operand.vmem [shape: f32[4,32], index: 10, kind: output, shape index: {}]  }
   0x1   :  { %v72_v0 = vld [vmem:[%s829_s5 + $0xf8] sm:$0xff]  ;;  %v71_v2 = vld [vmem:[%s829_s5 + $0xf0] sm:$0xff]  ;;  %v70_v4 = vld [vmem:[%s829_s5 + $0xe8] sm:$0xff]  ;;  %228 = vmatprep.mubr.f32.mxu1 %v537_v48  ;;  %vm361_vm3 = vcmask 261120   ;;  %vm436_vm4 = vcmask 257024  }
   0x2   :  { %v56_v1 = vld [vmem:[%s829_s5 + $0x78] sm:$0xff]  ;;  %445 = vmatprep.subr.mxu0 %v72_v0  ;;  %v55_v3 = vld [vmem:[%s829_s5 + $0x70] sm:$0xff]  ;;  %v54_v5 = vld [vmem:[%s829_s5 + $0x68] sm:$0xff] }
   0x3   :  { %446 = vmatpush3.msra.mxu0 %v56_v1  ;;  %v69_v6 = vld [vmem:[%s829_s5 + $0xe0] sm:$0xff]  ;;  %v68_v8 = vld [vmem:[%s829_s5 + $0xd8] sm:$0xff]  ;;  %v67_v10 = vld [vmem:[%s829_s5 + $0xd0] sm:$0xff] }
   0x4   :  { %447 = vmatprep.subr.mxu0 %v71_v2  ;;  %v53_v7 = vld [vmem:[%s829_s5 + $0x60] sm:$0xff]  ;;  %v52_v9 = vld [vmem:[%s829_s5 + $0x58] sm:$0xff]  ;;  %v51_v11 = vld [vmem:[%s829_s5 + $0x50] sm:$0xff] }
   0x5   :  { %448 = vmatpush3.msra.mxu0 %v55_v3  ;;  %v66_v12 = vld [vmem:[%s829_s5 + $0xc8] sm:$0xff]  ;;  %v37_v14 = vld [vmem:[%s831_s3] sm:$0xff]  ;;  %v64_v19 = vld [vmem:[%s829_s5 + $0xb8] sm:$0xff] }
   0x6   :  { %449 = vmatprep.subr.mxu0 %v70_v4  ;;  %v50_v13 = vld [vmem:[%s829_s5 + $0x48] sm:$0xff]  ;;  %v38_v15 = vld [vmem:[%s830_s2] sm:$0xf]  ;;  %v48_v21 = vld [vmem:[%s829_s5 + $0x38] sm:$0xff] }
   0x7   :  { %450 = vmatpush3.msra.mxu0 %v54_v5  ;;  %v65_v16 = vld [vmem:[%s829_s5 + $0xc0] sm:$0xff]  ;;  %v39_v17 = vunpack.c.l.bf16 %v38_v15  ;;  %v63_v22 = vld [vmem:[%s829_s5 + $0xb0] sm:$0xff]  ;;  %v62_v25 = vld [vmem:[%s829_s5 + $0xa8] sm:$0xff] }
   0x8   :  { %451 = vmatprep.subr.mxu0 %v69_v6  ;;  %v49_v18 = vld [vmem:[%s829_s5 + $0x40] sm:$0xff]  ;;  %v47_v24 = vld [vmem:[%s829_s5 + $0x30] sm:$0xff]  ;;  %v46_v26 = vld [vmem:[%s829_s5 + $0x28] sm:$0xff] }
   0x9   :  { %452 = vmatpush3.msra.mxu0 %v53_v7  ;;  %v40_v20 = vmul.f32 %v39_v17, %v37_v14  ;;  %v61_v27 = vld [vmem:[%s829_s5 + $0xa0] sm:$0xff]  ;;  %v60_v29 = vld [vmem:[%s829_s5 + $0x98] sm:$0xff]  ;;  %v59_v31 = vld [vmem:[%s829_s5 + $0x90] sm:$0xff] }
   0xa   :  { %453 = vmatprep.subr.mxu0 %v68_v8  ;;  %v45_v28 = vld [vmem:[%s829_s5 + $0x20] sm:$0xff]  ;;  %v44_v30 = vld [vmem:[%s829_s5 + $0x18] sm:$0xff]  ;;  %v43_v32 = vld [vmem:[%s829_s5 + $0x10] sm:$0xff] }
   0xb   :  { %454 = vmatpush3.msra.mxu0 %v52_v9  ;;  %v74_v23 = vcombine.high %v40_v20, %v40_v20  ;;  %v58_v33 = vld [vmem:[%s829_s5 + $0x88] sm:$0xff]  ;;  %v57_v35 = vld [vmem:[%s829_s5 + $0x80] sm:$0xff]  ;;  %v273_v49 = vld [vmem:[%s833_s7 + $0xf8] sm:$0xff] }
   0xc   :  { %455 = vmatprep.subr.mxu0 %v67_v10  ;;  %v42_v34 = vld [vmem:[%s829_s5 + $0x8] sm:$0xff]  ;;  %v41_v36 = vld [vmem:[%s829_s5] sm:$0xff]  ;;  %v257_v53 = vld [vmem:[%s833_s7 + $0x78] sm:$0xff] }
   0xd   :  { %456 = vmatpush3.msra.mxu0 %v51_v11  ;;  %140 = vmatprep.mubr.f32.mxu0 %v74_v23  ;;  %v159_v46 = vld [vmem:[%s832_s6 + $0x8] sm:$0xff]  ;;  %v158_v47 = vld [vmem:[%s832_s6] sm:$0xff]  ;;  %v272_v54 = vld [vmem:[%s833_s7 + $0xf0] sm:$0xff] }
   0xe   :  { %457 = vmatprep.subr.mxu0 %v66_v12  ;;  %194 = vmatprep.subr.mxu1 %v159_v46  ;;  %v256_v55 = vld [vmem:[%s833_s7 + $0x70] sm:$0xff]  ;;  %v271_v56 = vld [vmem:[%s833_s7 + $0xe8] sm:$0xff]  ;;  %v270_v58 = vld [vmem:[%s833_s7 + $0xe0] sm:$0xff] }
   0xf   :  { %458 = vmatpush3.msra.mxu0 %v50_v13  ;;  %195 = vmatpush1.msra.mxu1 %v158_v47  ;;  %v255_v57 = vld [vmem:[%s833_s7 + $0x68] sm:$0xff]  ;;  %v254_v59 = vld [vmem:[%s833_s7 + $0x60] sm:$0xff]  ;;  %v269_v60 = vld [vmem:[%s833_s7 + $0xd8] sm:$0xff] }
  0x10   :  { %459 = vmatprep.subr.mxu0 %v65_v16  ;;  %480 = vmatprep.subr.mxu1 %v273_v49  ;;  %v253_v61 = vld [vmem:[%s833_s7 + $0x58] sm:$0xff]  ;;  %v268_v62 = vld [vmem:[%s833_s7 + $0xd0] sm:$0xff]  ;;  %v267_v0 = vld [vmem:[%s833_s7 + $0xc8] sm:$0xff] }
  0x11   :  { %460 = vmatpush3.msra.mxu0 %v49_v18  ;;  %v252_v63 = vld [vmem:[%s833_s7 + $0x50] sm:$0xff]  ;;  %v251_v1 = vld [vmem:[%s833_s7 + $0x48] sm:$0xff]  ;;  %v266_v2 = vld [vmem:[%s833_s7 + $0xc0] sm:$0xff] }
  0x12   :  { %461 = vmatprep.subr.mxu0 %v64_v19  ;;  %v250_v3 = vld [vmem:[%s833_s7 + $0x40] sm:$0xff]  ;;  %v265_v4 = vld [vmem:[%s833_s7 + $0xb8] sm:$0xff]  ;;  %v264_v6 = vld [vmem:[%s833_s7 + $0xb0] sm:$0xff] }
  0x13   :  { %462 = vmatpush3.msra.mxu0 %v48_v21  ;;  %v249_v5 = vld [vmem:[%s833_s7 + $0x38] sm:$0xff]  ;;  %v248_v7 = vld [vmem:[%s833_s7 + $0x30] sm:$0xff]  ;;  %v263_v8 = vld [vmem:[%s833_s7 + $0xa8] sm:$0xff] }
  0x14   :  { %463 = vmatprep.subr.mxu0 %v63_v22  ;;  %v247_v9 = vld [vmem:[%s833_s7 + $0x28] sm:$0xff]  ;;  %v262_v10 = vld [vmem:[%s833_s7 + $0xa0] sm:$0xff]  ;;  %v261_v12 = vld [vmem:[%s833_s7 + $0x98] sm:$0xff] }
  0x15   :  { %464 = vmatpush3.msra.mxu0 %v47_v24  ;;  %v246_v11 = vld [vmem:[%s833_s7 + $0x20] sm:$0xff]  ;;  %v245_v13 = vld [vmem:[%s833_s7 + $0x18] sm:$0xff]  ;;  %v260_v14 = vld [vmem:[%s833_s7 + $0x90] sm:$0xff] }
  0x16   :  { %465 = vmatprep.subr.mxu0 %v62_v25  ;;  %v244_v15 = vld [vmem:[%s833_s7 + $0x10] sm:$0xff]  ;;  %v259_v16 = vld [vmem:[%s833_s7 + $0x88] sm:$0xff]  ;;  %v258_v18 = vld [vmem:[%s833_s7 + $0x80] sm:$0xff] }
  0x17   :  { %466 = vmatpush3.msra.mxu0 %v46_v26  ;;  %v243_v17 = vld [vmem:[%s833_s7 + $0x8] sm:$0xff]  ;;  %v242_v19 = vld [vmem:[%s833_s7] sm:$0xff] }
  0x18   :  { %467 = vmatprep.subr.mxu0 %v61_v27  ;;  %v353_v27 = vld [vmem:[%s835_s8 + $0x18] sm:$0xff] }
  0x19   :  { %468 = vmatpush3.msra.mxu0 %v45_v28  ;;  %v352_v28 = vld [vmem:[%s835_s8 + $0x10] sm:$0xff] }
  0x1a   :  { %469 = vmatprep.subr.mxu0 %v60_v29  ;;  %v351_v29 = vld [vmem:[%s835_s8 + $0x8] sm:$0xff] }
  0x1b   :  { %470 = vmatpush3.msra.mxu0 %v44_v30  ;;  %v350_v30 = vld [vmem:[%s835_s8] sm:$0xff] }
  0x1c   :  { %471 = vmatprep.subr.mxu0 %v59_v31  ;;  %v347_v31 = vld [vmem:[%s836_s0] sm:$0x3] }
  0x1d   :  { %472 = vmatpush3.msra.mxu0 %v43_v32 }
  0x1e   :  { %473 = vmatprep.subr.mxu0 %v58_v33  ;;  %v348_v33 = vunpack.c.l.bf16 %v347_v31 }
  0x1f   :  { %474 = vmatpush3.msra.mxu0 %v42_v34 }
  0x20   :  { %475 = vmatprep.subr.mxu0 %v57_v35 }
  0x21   :  { %476 = vmatpush3.msra.mxu0 %v41_v36 }
  0x22   :  { %141 = vmatmul.mubr.f32.vlgmr.msra.gmra.mxu0 %v40_v20  ;;  %520 = vmatprep.subr.mxu0 %v537_v48  ;;  %v235_v20 = vld [vmem:[%s834_s1] sm:$0xf] }
  0x23   :  { %v236_v22 = vunpack.c.l.bf16 %v235_v20  ;;  %521 = vmatpush3.msra.mxu0 %v353_v27  ;;  %528 = vmatprep.mubr.msk.f32.mxu0 %vm538_vm2, %v537_v48 }
  0x24   :  { %522 = vmatprep.subr.mxu0 %v537_v48 }
  0x25   :  { %523 = vmatpush3.msra.mxu0 %v352_v28 }
  0x26   :  { %524 = vmatprep.subr.mxu0 %v537_v48 }
  0x27   :  { %525 = vmatpush3.msra.mxu0 %v351_v29 }
  0x28   :  { %526 = vmatprep.subr.mxu0 %v537_v48 }
  0x29   :  { %527 = vmatpush3.msra.mxu0 %v350_v30 }
  0xe2   :  { %v477_v37 = vpop.f32.mrf.mxu0 }
  0xe4   :  { %v478_v38 = vpop.f32.mrf.mxu0 }
  0xe5   :  { %v479_v39 = vadd.f32 %v478_v38, %v477_v37  ;;  %v443_v37 = vld [vmem:[%s837_s9] ss:$0 sm:$0xff] }
  0xe7   :  { %v147_v40 = vsel %vm146_vm0, %v479_v39, -inf }
  0xe8   :  { %148 = vmax.xlane.f32.xlu0 %v147_v40 }
 0x171   :  { %v149_v41 = vpop.xlane.xlu0 %148 }
 0x172   :  { %v150_v42 = vsub.f32 %v479_v39, %v149_v41 }
 0x174   :  { %v151_v43 = vmul.f32 1.442695, %v150_v42 }
 0x176   :  { %533 = vpow2.f32 %v151_v43 }
 0x183   :  { %v534_v44 = vpop.eup %533 }
 0x184   :  { %v153_v45 = vsel %vm146_vm0, %v534_v44, 0.0 }
 0x185   :  { %154 = vadd.xlane.f32.xlu0 %v153_v45 }
 0x20e   :  { %v155_v50 = vpop.xlane.xlu0 %154 }
 0x20f   :  { %535 = vrcp.f32 %v155_v50 }
 0x21c   :  { %v536_v51 = vpop.eup %535 }
 0x21d   :  { %v157_v52 = vmul.f32 %v536_v51, %v534_v44 }
 0x21f   :  { %442 = vmatmul.mubr.msk.f32.vlgmr.msra.gmra.mxu1 %vm160_vm1, %v157_v52 }
 0x220   :  { %481 = vmatpush3.msra.mxu1 %v257_v53 }
 0x221   :  { %482 = vmatprep.subr.mxu1 %v272_v54 }
 0x222   :  { %483 = vmatpush3.msra.mxu1 %v256_v55 }
 0x223   :  { %484 = vmatprep.subr.mxu1 %v271_v56 }
 0x224   :  { %485 = vmatpush3.msra.mxu1 %v255_v57 }
 0x225   :  { %486 = vmatprep.subr.mxu1 %v270_v58 }
 0x226   :  { %487 = vmatpush3.msra.mxu1 %v254_v59 }
 0x227   :  { %488 = vmatprep.subr.mxu1 %v269_v60 }
 0x228   :  { %489 = vmatpush3.msra.mxu1 %v253_v61 }
 0x229   :  { %490 = vmatprep.subr.mxu1 %v268_v62 }
 0x22a   :  { %491 = vmatpush3.msra.mxu1 %v252_v63 }
 0x22b   :  { %492 = vmatprep.subr.mxu1 %v267_v0 }
 0x22c   :  { %493 = vmatpush3.msra.mxu1 %v251_v1 }
 0x22d   :  { %494 = vmatprep.subr.mxu1 %v266_v2 }
 0x22e   :  { %495 = vmatpush3.msra.mxu1 %v250_v3 }
 0x22f   :  { %496 = vmatprep.subr.mxu1 %v265_v4 }
 0x230   :  { %497 = vmatpush3.msra.mxu1 %v249_v5 }
 0x231   :  { %498 = vmatprep.subr.mxu1 %v264_v6 }
 0x232   :  { %499 = vmatpush3.msra.mxu1 %v248_v7 }
 0x233   :  { %500 = vmatprep.subr.mxu1 %v263_v8 }
 0x234   :  { %501 = vmatpush3.msra.mxu1 %v247_v9 }
 0x235   :  { %502 = vmatprep.subr.mxu1 %v262_v10 }
 0x236   :  { %503 = vmatpush3.msra.mxu1 %v246_v11 }
 0x237   :  { %504 = vmatprep.subr.mxu1 %v261_v12 }
 0x238   :  { %505 = vmatpush3.msra.mxu1 %v245_v13 }
 0x239   :  { %506 = vmatprep.subr.mxu1 %v260_v14 }
 0x23a   :  { %507 = vmatpush3.msra.mxu1 %v244_v15 }
 0x23b   :  { %508 = vmatprep.subr.mxu1 %v259_v16 }
 0x23c   :  { %509 = vmatpush3.msra.mxu1 %v243_v17 }
 0x23d   :  { %510 = vmatprep.subr.mxu1 %v258_v18 }
 0x23e   :  { %511 = vmatpush3.msra.mxu1 %v242_v19 }
 0x2df   :  { %v230_v21 = vpop.f32.mrf.mxu1 }
 0x2e1   :  { %v232_v23 = vpop.f32.mrf.mxu1 }
 0x2e2   :  { %v239_v24 = vcombine.low %v230_v21, %v232_v23 }
 0x2e4   :  { %v241_v25 = vmul.f32 %v239_v24, %v236_v22 }
 0x2e6   :  { %v275_v26 = vcombine.high %v241_v25, %v241_v25 }
 0x2e8   :  { %341 = vmatprep.mubr.f32.mxu1 %v275_v26 }
 0x2e9   :  { %342 = vmatmul.mubr.f32.vlgmr.msra.gmra.mxu1 %v241_v25 }
 0x3a9   :  { %v512_v32 = vpop.f32.mrf.mxu1 }
 0x3ab   :  { %v513_v34 = vpop.f32.mrf.mxu1 }
 0x3ac   :  { %v514_v35 = vadd.f32 %v513_v34, %v512_v32 }
 0x3ae   :  { %v349_v36 = vadd.f32 %v514_v35, %v348_v33 }
 0x3b0   :  { %529 = vmatmul.mubr.msk.f32.vlgmr.msra.gmra.mxu0 %vm361_vm3, %v349_v36 }
 0x470   :  { %v431_v38 = vpop.f32.mrf.mxu0 }
 0x471   :  { %v432_v39 = vadd.f32 %v443_v37, %v431_v38 }
 0x472   :  { %v530_v40 = vpop.f32.mrf.mxu0 }
 0x473   :  { %v435_v41 = vmax.f32 %v432_v39, 0.0 }
 0x475   :  { %437 = vst.msk [vmem:[%s838_s10] sm:$0xf] %vm436_vm4, %v435_v41 }

// kernel: kgnnls_item_encoder.4
= control target key start
LH: loop header
LB: loop body
LE: loop exit
PB: predicated region body
PF: predicated region fallthrough
CT: control target
= control target key end

     0   :  { %vm55_vm0 = vcmask 1043456   ;;  %v864_v1 = vmov 0.0   ;;  %vm42_vm1 = vcmask 31744   ;;  %vm286_vm2 = vcmask 64512   ;;  %s1222_s3 = inlined_call_operand.vmem [shape: f32[4,256], index: 3, kind: input, shape index: {}]   ;;  %s1223_s4 = inlined_call_operand.vmem [shape: f32[32,4], index: 4, kind: input, shape index: {}]   ;;  %s1224_s5 = inlined_call_operand.vmem [shape: f32[256,8], index: 5, kind: input, shape index: {}]   ;;  %s1225_s2 = inlined_call_operand.vmem [shape: bf16[32,256], index: 2, kind: input, shape index: {}]   ;;  %s1226_s6 = inlined_call_operand.vmem [shape: f32[8,256], index: 6, kind: input, shape index: {}]   ;;  %s1227_s7 = inlined_call_operand.vmem [shape: f32[256,32], index: 7, kind: input, shape index: {}]   ;;  %s1228_s1 = inlined_call_operand.vmem [shape: bf16[32,256], index: 1, kind: input, shape index: {}]   ;;  %s1229_s8 = inlined_call_operand.vmem [shape: f32[32,32], index: 8, kind: input, shape index: {}]   ;;  %s1230_s0 = inlined_call_operand.vmem [shape: bf16[32,32], index: 0, kind: input, shape index: {}]   ;;  %s1231_s9 = inlined_call_operand.vmem [shape: f32[1,32], index: 9, kind: input, shape index: {}]   ;;  %s1232_s10 = inlined_call_operand.vmem [shape: f32[32,32], index: 10, kind: output, shape index: {}]  }
   0x1   :  { %v35_v0 = vld [vmem:[%s1222_s3] sm:$0xff]  ;;  %124 = vmatprep.mubr.f32.mxu1 %v864_v1  ;;  %409 = vmatprep.mubr.f32.mxu0 %v864_v1  ;;  %v200_v4 = vld [vmem:[%s1224_s5 + $0xf8] sm:$0xff]  ;;  %v199_v6 = vld [vmem:[%s1224_s5 + $0xf0] sm:$0xff]  ;;  %vm594_vm3 = vcmask 261120  }
   0x2   :  { %v41_v2 = vcombine.high %v35_v0, %v35_v0  ;;  %v36_v3 = vld [vmem:[%s1223_s4] sm:$0xff]  ;;  %v184_v5 = vld [vmem:[%s1224_s5 + $0x78] sm:$0xff]  ;;  %v183_v7 = vld [vmem:[%s1224_s5 + $0x70] sm:$0xff] }
   0x3   :  { %v37_v8 = vld [vmem:[%s1223_s4 + $0x8] sm:$0xff]  ;;  %v197_v11 = vld [vmem:[%s1224_s5 + $0xe0] sm:$0xff]  ;;  %v38_v13 = vld [vmem:[%s1223_s4 + $0x10] sm:$0xff] }
   0x4   :  { %704 = vmatprep.subr.msk.mxu1 %vm55_vm0, %v41_v2  ;;  %v198_v9 = vld [vmem:[%s1224_s5 + $0xe8] sm:$0xff]  ;;  %v181_v12 = vld [vmem:[%s1224_s5 + $0x60] sm:$0xff]  ;;  %v196_v14 = vld [vmem:[%s1224_s5 + $0xd8] sm:$0xff] }
   0x5   :  { %705 = vmatpush1.msk.msra.mxu1 %vm55_vm0, %v35_v0  ;;  %v182_v10 = vld [vmem:[%s1224_s5 + $0x68] sm:$0xff]  ;;  %v180_v15 = vld [vmem:[%s1224_s5 + $0x58] sm:$0xff]  ;;  %v195_v16 = vld [vmem:[%s1224_s5 + $0xd0] sm:$0xff] }
   0x6   :  { %706 = vmatmul.mubr.msk.f32.vlgmr.msra.gmra.mxu1 %vm42_vm1, %v36_v3  ;;  %728 = vmatprep.subr.mxu1 %v200_v4  ;;  %v179_v17 = vld [vmem:[%s1224_s5 + $0x50] sm:$0xff]  ;;  %v39_v18 = vld [vmem:[%s1223_s4 + $0x18] sm:$0xff]  ;;  %v194_v19 = vld [vmem:[%s1224_s5 + $0xc8] sm:$0xff] }
   0x7   :  { %130 = vmatprep.mubr.f32.mxu1 %v864_v1  ;;  %729 = vmatpush3.msra.mxu1 %v184_v5  ;;  %v178_v20 = vld [vmem:[%s1224_s5 + $0x48] sm:$0xff]  ;;  %v193_v21 = vld [vmem:[%s1224_s5 + $0xc0] sm:$0xff]  ;;  %v192_v23 = vld [vmem:[%s1224_s5 + $0xb8] sm:$0xff] }
   0x8   :  { %730 = vmatprep.subr.mxu1 %v199_v6  ;;  %v177_v22 = vld [vmem:[%s1224_s5 + $0x40] sm:$0xff]  ;;  %v176_v24 = vld [vmem:[%s1224_s5 + $0x38] sm:$0xff]  ;;  %v191_v25 = vld [vmem:[%s1224_s5 + $0xb0] sm:$0xff] }
   0x9   :  { %731 = vmatpush3.msra.mxu1 %v183_v7  ;;  %v175_v26 = vld [vmem:[%s1224_s5 + $0x30] sm:$0xff]  ;;  %v190_v27 = vld [vmem:[%s1224_s5 + $0xa8] sm:$0xff]  ;;  %v189_v29 = vld [vmem:[%s1224_s5 + $0xa0] sm:$0xff] }
   0xa   :  { %707 = vmatmul.mubr.msk.f32.gmra.mxu1 %vm42_vm1, %v37_v8  ;;  %732 = vmatprep.subr.mxu1 %v198_v9  ;;  %v174_v28 = vld [vmem:[%s1224_s5 + $0x28] sm:$0xff]  ;;  %v173_v30 = vld [vmem:[%s1224_s5 + $0x20] sm:$0xff]  ;;  %v188_v31 = vld [vmem:[%s1224_s5 + $0x98] sm:$0xff] }
   0xb   :  { %136 = vmatprep.mubr.f32.mxu1 %v864_v1  ;;  %733 = vmatpush3.msra.mxu1 %v182_v10  ;;  %v172_v32 = vld [vmem:[%s1224_s5 + $0x18] sm:$0xff]  ;;  %v187_v33 = vld [vmem:[%s1224_s5 + $0x90] sm:$0xff]  ;;  %v186_v35 = vld [vmem:[%s1224_s5 + $0x88] sm:$0xff] }
   0xc   :  { %734 = vmatprep.subr.mxu1 %v197_v11  ;;  %v171_v34 = vld [vmem:[%s1224_s5 + $0x10] sm:$0xff]  ;;  %v170_v36 = vld [vmem:[%s1224_s5 + $0x8] sm:$0xff]  ;;  %v185_v37 = vld [vmem:[%s1224_s5 + $0x80] sm:$0xff] }
   0xd   :  { %735 = vmatpush3.msra.mxu1 %v181_v12  ;;  %v169_v38 = vld [vmem:[%s1224_s5] sm:$0xff]  ;;  %v150_v43 = vld [vmem:[%s1225_s2 + $0x8] sm:$0xff]  ;;  %v151_v50 = vld [vmem:[%s1225_s2 + $0x10] sm:$0xff] }
   0xe   :  { %708 = vmatmul.mubr.msk.f32.gmra.mxu1 %vm42_vm1, %v38_v13  ;;  %736 = vmatprep.subr.mxu1 %v196_v14  ;;  %v149_v39 = vld [vmem:[%s1225_s2] sm:$0xff]  ;;  %v156_v46 = vunpack.c.h.bf16 %v150_v43  ;;  %v155_v49 = vunpack.c.l.bf16 %v150_v43  ;;  %v158_v53 = vunpack.c.h.bf16 %v151_v50  ;;  %v157_v56 = vunpack.c.l.bf16 %v151_v50  ;;  %v152_v57 = vld [vmem:[%s1225_s2 + $0x18] sm:$0xff]  ;;  %v484_v50 = vld [vmem:[%s1227_s7 + $0xf0] sm:$0xff] }
   0xf   :  { %142 = vmatprep.mubr.f32.mxu1 %v864_v1  ;;  %737 = vmatpush3.msra.mxu1 %v180_v15  ;;  %v154_v40 = vunpack.c.h.bf16 %v149_v39  ;;  %v153_v42 = vunpack.c.l.bf16 %v149_v39  ;;  %v160_v60 = vunpack.c.h.bf16 %v152_v57  ;;  %v159_v63 = vunpack.c.l.bf16 %v152_v57  ;;  %v466_v57 = vld [vmem:[%s1227_s7 + $0x60] sm:$0xff] }
  0x10   :  { %738 = vmatprep.subr.mxu1 %v195_v16 }
  0x11   :  { %739 = vmatpush3.msra.mxu1 %v179_v17 }
  0x12   :  { %709 = vmatmul.mubr.msk.f32.gmra.mxu1 %vm42_vm1, %v39_v18  ;;  %740 = vmatprep.subr.mxu1 %v194_v19 }
  0x13   :  { %741 = vmatpush3.msra.mxu1 %v178_v20 }
  0x14   :  { %742 = vmatprep.subr.mxu1 %v193_v21 }
  0x15   :  { %743 = vmatpush3.msra.mxu1 %v177_v22 }
  0x16   :  { %744 = vmatprep.subr.mxu1 %v192_v23 }
  0x17   :  { %745 = vmatpush3.msra.mxu1 %v176_v24 }
  0x18   :  { %746 = vmatprep.subr.mxu1 %v191_v25 }
  0x19   :  { %747 = vmatpush3.msra.mxu1 %v175_v26 }
  0x1a   :  { %748 = vmatprep.subr.mxu1 %v190_v27 }
  0x1b   :  { %749 = vmatpush3.msra.mxu1 %v174_v28 }
  0x1c   :  { %750 = vmatprep.subr.mxu1 %v189_v29 }
  0x1d   :  { %751 = vmatpush3.msra.mxu1 %v173_v30 }
  0x1e   :  { %752 = vmatprep.subr.mxu1 %v188_v31 }
  0x1f   :  { %753 = vmatpush3.msra.mxu1 %v172_v32 }
  0x20   :  { %754 = vmatprep.subr.mxu1 %v187_v33 }
  0x21   :  { %755 = vmatpush3.msra.mxu1 %v171_v34 }
  0x22   :  { %756 = vmatprep.subr.mxu1 %v186_v35 }
  0x23   :  { %757 = vmatpush3.msra.mxu1 %v170_v36 }
  0x24   :  { %758 = vmatprep.subr.mxu1 %v185_v37 }
  0x25   :  { %759 = vmatpush3.msra.mxu1 %v169_v38 }
  0xc6   :  { %v126_v41 = vpop.f32.mrf.mxu1 }
  0xc7   :  { %v161_v47 = vmul.f32 %v153_v42, %v126_v41  ;;  %v331_v41 = vld [vmem:[%s1226_s6] sm:$0xff]  ;;  %v485_v42 = vld [vmem:[%s1227_s7 + $0xf8] sm:$0xff] }
  0xc8   :  { %v128_v44 = vpop.f32.mrf.mxu1 }
  0xc9   :  { %v162_v45 = vmul.f32 %v154_v40, %v128_v44  ;;  %v332_v40 = vld [vmem:[%s1226_s6 + $0x8] sm:$0xff] }
  0xca   :  { %v132_v48 = vpop.f32.mrf.mxu1  ;;  %375 = vmatprep.subr.mxu0 %v332_v40  ;;  %v437_v40 = vld [vmem:[%s1228_s1 + $0x18] sm:$0xff] }
  0xcb   :  { %265 = vmatprep.mubr.f32.mxu1 %v162_v45  ;;  %v163_v54 = vmul.f32 %v155_v49, %v132_v48  ;;  %376 = vmatpush1.msra.mxu0 %v331_v41  ;;  %v469_v49 = vld [vmem:[%s1227_s7 + $0x78] sm:$0xff] }
  0xcc   :  { %v134_v51 = vpop.f32.mrf.mxu1  ;;  %266 = vmatmul.mubr.f32.vlgmr.msra.gmra.mxu1 %v161_v47  ;;  %772 = vmatprep.subr.mxu0 %v485_v42 }
  0xcd   :  { %v164_v52 = vmul.f32 %v156_v46, %v134_v51  ;;  %v468_v51 = vld [vmem:[%s1227_s7 + $0x70] sm:$0xff] }
  0xce   :  { %v138_v55 = vpop.f32.mrf.mxu1 }
  0xcf   :  { %270 = vmatprep.mubr.f32.mxu1 %v164_v52  ;;  %v165_v61 = vmul.f32 %v157_v56, %v138_v55  ;;  %v467_v55 = vld [vmem:[%s1227_s7 + $0x68] sm:$0xff]  ;;  %v482_v56 = vld [vmem:[%s1227_s7 + $0xe0] sm:$0xff] }
  0xd0   :  { %v140_v58 = vpop.f32.mrf.mxu1  ;;  %271 = vmatmul.mubr.f32.gmra.mxu1 %v163_v54 }
  0xd1   :  { %v166_v59 = vmul.f32 %v158_v53, %v140_v58  ;;  %v483_v53 = vld [vmem:[%s1227_s7 + $0xe8] sm:$0xff] }
  0xd2   :  { %v144_v62 = vpop.f32.mrf.mxu1 }
  0xd3   :  { %275 = vmatprep.mubr.f32.mxu1 %v166_v59  ;;  %v167_v3 = vmul.f32 %v159_v63, %v144_v62  ;;  %v481_v59 = vld [vmem:[%s1227_s7 + $0xd8] sm:$0xff]  ;;  %v480_v62 = vld [vmem:[%s1227_s7 + $0xd0] sm:$0xff] }
  0xd4   :  { %v146_v0 = vpop.f32.mrf.mxu1  ;;  %276 = vmatmul.mubr.f32.gmra.mxu1 %v165_v61  ;;  %v465_v61 = vld [vmem:[%s1227_s7 + $0x58] sm:$0xff]  ;;  %v464_v63 = vld [vmem:[%s1227_s7 + $0x50] sm:$0xff] }
  0xd5   :  { %v168_v2 = vmul.f32 %v160_v60, %v146_v0 }
  0xd7   :  { %280 = vmatprep.mubr.f32.mxu1 %v168_v2  ;;  %v479_v2 = vld [vmem:[%s1227_s7 + $0xc8] sm:$0xff] }
  0xd8   :  { %281 = vmatmul.mubr.f32.gmra.mxu1 %v167_v3 }
 0x18c   :  { %v760_v4 = vpop.f32.mrf.mxu1 }
 0x18e   :  { %v761_v5 = vpop.f32.mrf.mxu1 }
 0x18f   :  { %v762_v6 = vadd.f32 %v761_v5, %v760_v4  ;;  %v463_v4 = vld [vmem:[%s1227_s7 + $0x48] sm:$0xff]  ;;  %v478_v5 = vld [vmem:[%s1227_s7 + $0xc0] sm:$0xff] }
 0x190   :  { %v763_v7 = vpop.f32.mrf.mxu1 }
 0x191   :  { %v287_v8 = vsel %vm286_vm2, %v762_v6, -inf }
 0x192   :  { %v764_v9 = vpop.f32.mrf.mxu1  ;;  %288 = vmax.xlane.f32.xlu0 %v287_v8  ;;  %v476_v8 = vld [vmem:[%s1227_s7 + $0xb0] sm:$0xff] }
 0x193   :  { %v765_v10 = vadd.f32 %v764_v9, %v763_v7  ;;  %v461_v7 = vld [vmem:[%s1227_s7 + $0x38] sm:$0xff]  ;;  %v460_v9 = vld [vmem:[%s1227_s7 + $0x30] sm:$0xff] }
 0x194   :  { %v766_v11 = vpop.f32.mrf.mxu1 }
 0x195   :  { %v290_v12 = vsel %vm286_vm2, %v765_v10, -inf }
 0x196   :  { %v767_v13 = vpop.f32.mrf.mxu1  ;;  %291 = vmax.xlane.f32.xlu0 %v290_v12  ;;  %v474_v12 = vld [vmem:[%s1227_s7 + $0xa0] sm:$0xff] }
 0x197   :  { %v768_v14 = vadd.f32 %v767_v13, %v766_v11  ;;  %v459_v11 = vld [vmem:[%s1227_s7 + $0x28] sm:$0xff]  ;;  %v458_v13 = vld [vmem:[%s1227_s7 + $0x20] sm:$0xff] }
 0x198   :  { %v769_v15 = vpop.f32.mrf.mxu1 }
 0x199   :  { %v293_v16 = vsel %vm286_vm2, %v768_v14, -inf }
 0x19a   :  { %v770_v17 = vpop.f32.mrf.mxu1  ;;  %294 = vmax.xlane.f32.xlu1 %v293_v16  ;;  %v472_v16 = vld [vmem:[%s1227_s7 + $0x90] sm:$0xff] }
 0x19b   :  { %v771_v18 = vadd.f32 %v770_v17, %v769_v15  ;;  %v457_v15 = vld [vmem:[%s1227_s7 + $0x18] sm:$0xff]  ;;  %v456_v17 = vld [vmem:[%s1227_s7 + $0x10] sm:$0xff] }
 0x19d   :  { %v296_v19 = vsel %vm286_vm2, %v771_v18, -inf }
 0x19e   :  { %297 = vmax.xlane.f32.xlu1 %v296_v19  ;;  %v455_v19 = vld [vmem:[%s1227_s7 + $0x8] sm:$0xff] }
 0x21b   :  { %v289_v20 = vpop.xlane.xlu0 %288 }
 0x21c   :  { %v299_v21 = vsub.f32 %v762_v6, %v289_v20  ;;  %v477_v6 = vld [vmem:[%s1227_s7 + $0xb8] sm:$0xff]  ;;  %v470_v20 = vld [vmem:[%s1227_s7 + $0x80] sm:$0xff] }
 0x21e   :  { %v303_v22 = vmul.f32 1.442695, %v299_v21  ;;  %v454_v21 = vld [vmem:[%s1227_s7] sm:$0xff] }
 0x21f   :  { %v292_v23 = vpop.xlane.xlu0 %291 }
 0x220   :  { %848 = vpow2.f32 %v303_v22  ;;  %v300_v24 = vsub.f32 %v765_v10, %v292_v23  ;;  %v475_v10 = vld [vmem:[%s1227_s7 + $0xa8] sm:$0xff]  ;;  %v434_v22 = vld [vmem:[%s1228_s1] sm:$0xff] }
 0x221   :  { %v439_v23 = vunpack.c.h.bf16 %v434_v22 }
 0x222   :  { %v305_v25 = vmul.f32 1.442695, %v300_v24 }
 0x223   :  { %v295_v26 = vpop.xlane.xlu1 %294 }
 0x224   :  { %850 = vpow2.f32 %v305_v25  ;;  %v301_v27 = vsub.f32 %v768_v14, %v295_v26  ;;  %v473_v14 = vld [vmem:[%s1227_s7 + $0x98] sm:$0xff]  ;;  %v438_v25 = vunpack.c.l.bf16 %v434_v22  ;;  %v435_v26 = vld [vmem:[%s1228_s1 + $0x8] sm:$0xff] }
 0x226   :  { %v307_v28 = vmul.f32 1.442695, %v301_v27 }
 0x227   :  { %v298_v29 = vpop.xlane.xlu1 %297 }
 0x228   :  { %852 = vpow2.f32 %v307_v28  ;;  %v302_v30 = vsub.f32 %v771_v18, %v298_v29  ;;  %v471_v18 = vld [vmem:[%s1227_s7 + $0x88] sm:$0xff]  ;;  %v441_v29 = vunpack.c.h.bf16 %v435_v26 }
 0x22a   :  { %v309_v31 = vmul.f32 1.442695, %v302_v30 }
 0x22c   :  { %854 = vpow2.f32 %v309_v31 }
 0x22d   :  { %v849_v32 = vpop.eup %848 }
 0x22e   :  { %v311_v33 = vsel %vm286_vm2, %v849_v32, 0.0 }
 0x22f   :  { %312 = vadd.xlane.f32.xlu0 %v311_v33  ;;  %v436_v33 = vld [vmem:[%s1228_s1 + $0x10] sm:$0xff] }
 0x231   :  { %v851_v34 = vpop.eup %850 }
 0x232   :  { %v314_v35 = vsel %vm286_vm2, %v851_v34, 0.0 }
 0x233   :  { %315 = vadd.xlane.f32.xlu1 %v314_v35 }
 0x235   :  { %v853_v36 = vpop.eup %852 }
 0x236   :  { %v317_v37 = vsel %vm286_vm2, %v853_v36, 0.0 }
 0x237   :  { %318 = vadd.xlane.f32.xlu0 %v317_v37 }
 0x239   :  { %v855_v38 = vpop.eup %854 }
 0x23a   :  { %v320_v39 = vsel %vm286_vm2, %v855_v38, 0.0 }
 0x23b   :  { %321 = vadd.xlane.f32.xlu1 %v320_v39  ;;  %v442_v39 = vunpack.c.l.bf16 %v436_v33 }
 0x2b8   :  { %v313_v43 = vpop.xlane.xlu0 %312 }
 0x2b9   :  { %856 = vrcp.f32 %v313_v43  ;;  %v445_v43 = vunpack.c.h.bf16 %v437_v40 }
 0x2bc   :  { %v316_v44 = vpop.xlane.xlu1 %315 }
 0x2bd   :  { %858 = vrcp.f32 %v316_v44 }
 0x2c0   :  { %v319_v45 = vpop.xlane.xlu0 %318 }
 0x2c1   :  { %860 = vrcp.f32 %v319_v45 }
 0x2c4   :  { %v322_v46 = vpop.xlane.xlu1 %321 }
 0x2c5   :  { %862 = vrcp.f32 %v322_v46  ;;  %v444_v46 = vunpack.c.l.bf16 %v437_v40 }
 0x2c6   :  { %v857_v47 = vpop.eup %856 }
 0x2c7   :  { %v327_v48 = vmul.f32 %v857_v47, %v849_v32  ;;  %v440_v32 = vunpack.c.l.bf16 %v435_v26 }
 0x2c9   :  { %710 = vmatmul.mubr.msk.f32.vlgmr.msra.gmra.mxu0 %vm286_vm2, %v327_v48 }
 0x2ca   :  { %v859_v52 = vpop.eup %858  ;;  %415 = vmatprep.mubr.f32.mxu0 %v864_v1  ;;  %773 = vmatpush3.msra.mxu0 %v469_v49 }
 0x2cb   :  { %v328_v54 = vmul.f32 %v859_v52, %v851_v34  ;;  %774 = vmatprep.subr.mxu0 %v484_v50  ;;  %v586_v50 = vld [vmem:[%s1229_s8 + $0x18] sm:$0xff]  ;;  %v584_v52 = vld [vmem:[%s1229_s8 + $0x8] sm:$0xff] }
 0x2cc   :  { %775 = vmatpush3.msra.mxu0 %v468_v51  ;;  %838 = vmatprep.subr.mxu1 %v586_v50  ;;  %v585_v51 = vld [vmem:[%s1229_s8 + $0x10] sm:$0xff] }
 0x2cd   :  { %711 = vmatmul.mubr.msk.f32.gmra.mxu0 %vm286_vm2, %v328_v54  ;;  %776 = vmatprep.subr.mxu0 %v483_v53  ;;  %v583_v53 = vld [vmem:[%s1229_s8] sm:$0xff] }
 0x2ce   :  { %v861_v58 = vpop.eup %860  ;;  %421 = vmatprep.mubr.f32.mxu0 %v864_v1  ;;  %777 = vmatpush3.msra.mxu0 %v467_v55  ;;  %v720_v54 = vld [vmem:[%s1230_s0] sm:$0xff]  }
 0x2cf   :  { %v329_v60 = vmul.f32 %v861_v58, %v853_v36  ;;  %778 = vmatprep.subr.mxu0 %v482_v56  ;;  %v443_v36 = vunpack.c.h.bf16 %v436_v33  ;;  %842 = vmatpush3.msra.mxu1 %v586_v50  ;;  %v721_v56 = vunpack.c.l.bf16 %v720_v54 }
 0x2d0   :  { %779 = vmatpush3.msra.mxu0 %v466_v57  ;;  %839 = vmatprep.subr.mxu1 %v585_v51 }
 0x2d1   :  { %712 = vmatmul.mubr.msk.f32.gmra.mxu0 %vm286_vm2, %v329_v60  ;;  %780 = vmatprep.subr.mxu0 %v481_v59 }
 0x2d2   :  { %v863_v0 = vpop.eup %862  ;;  %427 = vmatprep.mubr.f32.mxu0 %v864_v1  ;;  %781 = vmatpush3.msra.mxu0 %v465_v61  ;;  %v462_v1 = vld [vmem:[%s1227_s7 + $0x40] sm:$0xff]  ;;  %v722_v61 = vunpack.c.h.bf16 %v720_v54 }
 0x2d3   :  { %v330_v3 = vmul.f32 %v863_v0, %v855_v38  ;;  %782 = vmatprep.subr.mxu0 %v480_v62  ;;  %843 = vmatpush3.msra.mxu1 %v585_v51 }
 0x2d4   :  { %783 = vmatpush3.msra.mxu0 %v464_v63  ;;  %840 = vmatprep.subr.mxu1 %v584_v52  ;;  %v727_v63 = vld [vmem:[%s1230_s0 + $0x8] sm:$0xff]  }
 0x2d5   :  { %713 = vmatmul.mubr.msk.f32.gmra.mxu0 %vm286_vm2, %v330_v3  ;;  %784 = vmatprep.subr.mxu0 %v479_v2 }
 0x2d6   :  { %785 = vmatpush3.msra.mxu0 %v463_v4  ;;  %844 = vmatpush3.msra.mxu1 %v584_v52  ;;  %v725_v4 = vunpack.c.l.bf16 %v727_v63 }
 0x2d7   :  { %786 = vmatprep.subr.mxu0 %v478_v5  ;;  %841 = vmatprep.subr.mxu1 %v583_v53 }
 0x2d8   :  { %787 = vmatpush3.msra.mxu0 %v462_v1  ;;  %845 = vmatpush3.msra.mxu1 %v583_v53 }
 0x2d9   :  { %788 = vmatprep.subr.mxu0 %v477_v6 }
 0x2da   :  { %789 = vmatpush3.msra.mxu0 %v461_v7 }
 0x2db   :  { %790 = vmatprep.subr.mxu0 %v476_v8  ;;  %v726_v8 = vunpack.c.h.bf16 %v727_v63 }
 0x2dc   :  { %791 = vmatpush3.msra.mxu0 %v460_v9 }
 0x2dd   :  { %792 = vmatprep.subr.mxu0 %v475_v10 }
 0x2de   :  { %793 = vmatpush3.msra.mxu0 %v459_v11 }
 0x2df   :  { %794 = vmatprep.subr.mxu0 %v474_v12  ;;  %v714_v12 = vld [vmem:[%s1231_s9] ss:$0 sm:$0xff] }
 0x2e0   :  { %795 = vmatpush3.msra.mxu0 %v458_v13 }
 0x2e1   :  { %796 = vmatprep.subr.mxu0 %v473_v14 }
 0x2e2   :  { %797 = vmatpush3.msra.mxu0 %v457_v15 }
 0x2e3   :  { %798 = vmatprep.subr.mxu0 %v472_v16 }
 0x2e4   :  { %799 = vmatpush3.msra.mxu0 %v456_v17 }
 0x2e5   :  { %800 = vmatprep.subr.mxu0 %v471_v18 }
 0x2e6   :  { %801 = vmatpush3.msra.mxu0 %v455_v19 }
 0x2e7   :  { %802 = vmatprep.subr.mxu0 %v470_v20 }
 0x2e8   :  { %803 = vmatpush3.msra.mxu0 %v454_v21 }
 0x2e9   :  { %824 = vmatprep.subr.mxu0 %v586_v50 }
 0x389   :  { %v411_v24 = vpop.f32.mrf.mxu0 }
 0x38a   :  { %v446_v30 = vmul.f32 %v438_v25, %v411_v24 }
 0x38b   :  { %v413_v27 = vpop.f32.mrf.mxu0 }
 0x38c   :  { %v447_v28 = vmul.f32 %v439_v23, %v413_v27 }
 0x38d   :  { %v417_v31 = vpop.f32.mrf.mxu0 }
 0x38e   :  { %550 = vmatprep.mubr.f32.mxu0 %v447_v28  ;;  %v448_v37 = vmul.f32 %v440_v32, %v417_v31 }
 0x38f   :  { %v419_v34 = vpop.f32.mrf.mxu0  ;;  %551 = vmatmul.mubr.f32.vlgmr.msra.gmra.mxu0 %v446_v30 }
 0x390   :  { %v449_v35 = vmul.f32 %v441_v29, %v419_v34  ;;  %825 = vmatpush3.msra.mxu0 %v586_v50 }
 0x391   :  { %v423_v38 = vpop.f32.mrf.mxu0  ;;  %826 = vmatprep.subr.mxu0 %v585_v51 }
 0x392   :  { %555 = vmatprep.mubr.f32.mxu0 %v449_v35  ;;  %v450_v44 = vmul.f32 %v442_v39, %v423_v38  ;;  %827 = vmatpush3.msra.mxu0 %v585_v51 }
 0x393   :  { %v425_v41 = vpop.f32.mrf.mxu0  ;;  %556 = vmatmul.mubr.f32.gmra.mxu0 %v448_v37  ;;  %828 = vmatprep.subr.mxu0 %v584_v52 }
 0x394   :  { %v451_v42 = vmul.f32 %v443_v36, %v425_v41  ;;  %829 = vmatpush3.msra.mxu0 %v584_v52 }
 0x395   :  { %v429_v45 = vpop.f32.mrf.mxu0  ;;  %830 = vmatprep.subr.mxu0 %v583_v53 }
 0x396   :  { %560 = vmatprep.mubr.f32.mxu0 %v451_v42  ;;  %v452_v49 = vmul.f32 %v444_v46, %v429_v45  ;;  %831 = vmatpush3.msra.mxu0 %v583_v53 }
 0x397   :  { %v431_v47 = vpop.f32.mrf.mxu0  ;;  %561 = vmatmul.mubr.f32.gmra.mxu0 %v450_v44 }
 0x398   :  { %v453_v48 = vmul.f32 %v445_v43, %v431_v47 }
 0x39a   :  { %565 = vmatprep.mubr.f32.mxu0 %v453_v48 }
 0x39b   :  { %566 = vmatmul.mubr.f32.gmra.mxu0 %v452_v49 }
 0x44f   :  { %v804_v55 = vpop.f32.mrf.mxu0 }
 0x451   :  { %v805_v57 = vpop.f32.mrf.mxu0 }
 0x452   :  { %v806_v58 = vadd.f32 %v805_v57, %v804_v55 }
 0x453   :  { %v807_v59 = vpop.f32.mrf.mxu0 }
 0x454   :  { %v579_v60 = vadd.f32 %v806_v58, %v721_v56 }
 0x455   :  { %v808_v62 = vpop.f32.mrf.mxu0 }
 0x456   :  { %v809_v0 = vadd.f32 %v808_v62, %v807_v59  ;;  %832 = vmatprep.mubr.msk.f32.mxu0 %vm594_vm3, %v579_v60 }
 0x457   :  { %v810_v2 = vpop.f32.mrf.mxu0 }
 0x458   :  { %v580_v3 = vadd.f32 %v809_v0, %v722_v61 }
 0x459   :  { %v811_v5 = vpop.f32.mrf.mxu0 }
 0x45a   :  { %v812_v1 = vadd.f32 %v811_v5, %v810_v2  ;;  %833 = vmatmul.mubr.msk.f32.vlgmr.msra.gmra.mxu0 %vm594_vm3, %v580_v3 }
 0x45b   :  { %v813_v6 = vpop.f32.mrf.mxu0 }
 0x45c   :  { %v581_v7 = vadd.f32 %v812_v1, %v725_v4 }
 0x45d   :  { %v814_v9 = vpop.f32.mrf.mxu0 }
 0x45e   :  { %v815_v10 = vadd.f32 %v814_v9, %v813_v6  ;;  %835 = vmatprep.mubr.msk.f32.mxu1 %vm594_vm3, %v581_v7 }
 0x460   :  { %v582_v11 = vadd.f32 %v815_v10, %v726_v8 }
 0x462   :  { %836 = vmatmul.mubr.msk.f32.vlgmr.msra.gmra.mxu1 %vm594_vm3, %v582_v11 }
 0x51a   :  { %v834_v13 = vpop.f32.mrf.mxu0 }
 0x51b   :  { %v679_v14 = vadd.f32 %v834_v13, %v714_v12 }
 0x51c   :  { %v673_v15 = vpop.f32.mrf.mxu0 }
 0x51d   :  { %v693_v16 = vmax.f32 %v679_v14, 0.0  ;;  %v674_v17 = vadd.f32 %v714_v12, %v673_v15 }
 0x51f   :  { %697 = vst.msk [vmem:[%s1232_s10 + $0x8] sm:$0xff] %vm594_vm3, %v693_v16  ;;  %v692_v18 = vmax.f32 %v674_v17, 0.0 }
 0x521   :  { %696 = vst.msk [vmem:[%s1232_s10] sm:$0xff] %vm594_vm3, %v692_v18 }
 0x522   :  { %v837_v19 = vpop.f32.mrf.mxu1 }
 0x523   :  { %v689_v20 = vadd.f32 %v837_v19, %v714_v12 }
 0x524   :  { %v683_v21 = vpop.f32.mrf.mxu1 }
 0x525   :  { %v695_v22 = vmax.f32 %v689_v20, 0.0  ;;  %v684_v23 = vadd.f32 %v714_v12, %v683_v21 }
 0x527   :  { %699 = vst.msk [vmem:[%s1232_s10 + $0x18] sm:$0xff] %vm594_vm3, %v695_v22  ;;  %v694_v24 = vmax.f32 %v684_v23, 0.0 }
 0x529   :  { %698 = vst.msk [vmem:[%s1232_s10 + $0x10] sm:$0xff] %vm594_vm3, %v694_v24 }

// kernel: kgnnls_item_encoder.5
= control target key start
LH: loop header
LB: loop body
LE: loop exit
PB: predicated region body
PF: predicated region fallthrough
CT: control target
= control target key end

     0   :  { %s863_s0 = inlined_call_operand.vmem [shape: f32[4,32], index: 0, kind: input, shape index: {}]   ;;  %s864_s1 = inlined_call_operand.vmem [shape: f32[4,256], index: 1, kind: input, shape index: {}]   ;;  %s865_s2 = inlined_call_operand.vmem [shape: bf16[4,256], index: 2, kind: input, shape index: {}]   ;;  %s866_s3 = inlined_call_operand.vmem [shape: f32[4,256], index: 3, kind: input, shape index: {}]   ;;  %s867_s4 = inlined_call_operand.<no memory space> [shape: f32[1,1], index: 4, kind: input, shape index: {}]   ;;  %s868_s5 = inlined_call_operand.vmem [shape: f32[256,8], index: 5, kind: input, shape index: {}]   ;;  %s869_s6 = inlined_call_operand.vmem [shape: f32[8,256], index: 6, kind: input, shape index: {}]   ;;  %s870_s7 = inlined_call_operand.vmem [shape: f32[256,32], index: 7, kind: input, shape index: {}]   ;;  %s871_s8 = inlined_call_operand.vmem [shape: f32[32,32], index: 8, kind: input, shape index: {}]   ;;  %s872_s9 = inlined_call_operand.vmem [shape: f32[1,32], index: 9, kind: input, shape index: {}]   ;;  %s873_s10 = inlined_call_operand.hbm [shape: f32[4,32], index: 10, kind: output, shape index: {}]  }
   0x1   :  { %v73_v0 = vld [vmem:[%s868_s5 + $0xf8] sm:$0xff]  ;;  %v72_v2 = vld [vmem:[%s868_s5 + $0xf0] sm:$0xff]  ;;  %v71_v4 = vld [vmem:[%s868_s5 + $0xe8] sm:$0xff] }
   0x2   :  { %v57_v1 = vld [vmem:[%s868_s5 + $0x78] sm:$0xff]  ;;  %454 = vmatprep.subr.mxu0 %v73_v0  ;;  %v56_v3 = vld [vmem:[%s868_s5 + $0x70] sm:$0xff]  ;;  %v55_v5 = vld [vmem:[%s868_s5 + $0x68] sm:$0xff] }
   0x3   :  { %455 = vmatpush3.msra.mxu0 %v57_v1  ;;  %v70_v6 = vld [vmem:[%s868_s5 + $0xe0] sm:$0xff]  ;;  %v69_v8 = vld [vmem:[%s868_s5 + $0xd8] sm:$0xff]  ;;  %v68_v10 = vld [vmem:[%s868_s5 + $0xd0] sm:$0xff] }
   0x4   :  { %456 = vmatprep.subr.mxu0 %v72_v2  ;;  %v54_v7 = vld [vmem:[%s868_s5 + $0x60] sm:$0xff]  ;;  %v53_v9 = vld [vmem:[%s868_s5 + $0x58] sm:$0xff]  ;;  %v52_v11 = vld [vmem:[%s868_s5 + $0x50] sm:$0xff] }
   0x5   :  { %457 = vmatpush3.msra.mxu0 %v56_v3  ;;  %v67_v12 = vld [vmem:[%s868_s5 + $0xc8] sm:$0xff]  ;;  %v38_v14 = vld [vmem:[%s866_s3] sm:$0xff] }
   0x6   :  { %458 = vmatprep.subr.mxu0 %v71_v4  ;;  %v51_v13 = vld [vmem:[%s868_s5 + $0x48] sm:$0xff]  ;;  %v39_v15 = vld [vmem:[%s865_s2] sm:$0xf] }
   0x7   :  { %459 = vmatpush3.msra.mxu0 %v55_v5 }
   0x8   :  { %460 = vmatprep.subr.mxu0 %v70_v6 }
   0x9   :  { %461 = vmatpush3.msra.mxu0 %v54_v7 }
   0xa   :  { %462 = vmatprep.subr.mxu0 %v69_v8 }
   0xb   :  { %463 = vmatpush3.msra.mxu0 %v53_v9 }
   0xc   :  { %464 = vmatprep.subr.mxu0 %v68_v10 }
   0xd   :  { %17 = vsyncpa [#allocation4], 0  ;;  %465 = vmatpush3.msra.mxu0 %v52_v11  ;;  %v66_v16 = vld [vmem:[%s868_s5 + $0xc0] sm:$0xff]  ;;  %v40_v17 = vunpack.c.l.bf16 %v39_v15  ;;  %v65_v19 = vld [vmem:[%s868_s5 + $0xb8] sm:$0xff]  ;;  %vm147_vm0 = vcmask 60416   ;;  %v571_v48 = vmov 0.0  }
   0xe   :  { %466 = vmatprep.subr.mxu0 %v67_v12  ;;  %v50_v18 = vld [vmem:[%s868_s5 + $0x40] sm:$0xff]  ;;  %v49_v21 = vld [vmem:[%s868_s5 + $0x38] sm:$0xff]  ;;  %v64_v22 = vld [vmem:[%s868_s5 + $0xb0] sm:$0xff]  ;;  %229 = vmatprep.mubr.f32.mxu1 %v571_v48  ;;  %vm161_vm1 = vcmask 64512   ;;  %vm572_vm2 = vmmov 0   ;;  %vm360_vm3 = vcmask 261120  }
   0xf   :  { %467 = vmatpush3.msra.mxu0 %v51_v13  ;;  %v41_v20 = vmul.f32 %v40_v17, %v38_v14  ;;  %v48_v24 = vld [vmem:[%s868_s5 + $0x30] sm:$0xff]  ;;  %v63_v25 = vld [vmem:[%s868_s5 + $0xa8] sm:$0xff]  ;;  %v62_v27 = vld [vmem:[%s868_s5 + $0xa0] sm:$0xff]  ;;  %vm435_vm4 = vcmask 257024  }
  0x10   :  { %468 = vmatprep.subr.mxu0 %v66_v16  ;;  %v47_v26 = vld [vmem:[%s868_s5 + $0x28] sm:$0xff]  ;;  %v46_v28 = vld [vmem:[%s868_s5 + $0x20] sm:$0xff]  ;;  %v61_v29 = vld [vmem:[%s868_s5 + $0x98] sm:$0xff] }
  0x11   :  { %469 = vmatpush3.msra.mxu0 %v50_v18  ;;  %v75_v23 = vcombine.high %v41_v20, %v41_v20  ;;  %v45_v30 = vld [vmem:[%s868_s5 + $0x18] sm:$0xff]  ;;  %v60_v31 = vld [vmem:[%s868_s5 + $0x90] sm:$0xff]  ;;  %v59_v33 = vld [vmem:[%s868_s5 + $0x88] sm:$0xff] }
  0x12   :  { %470 = vmatprep.subr.mxu0 %v65_v19  ;;  %v44_v32 = vld [vmem:[%s868_s5 + $0x10] sm:$0xff]  ;;  %v43_v34 = vld [vmem:[%s868_s5 + $0x8] sm:$0xff]  ;;  %v58_v35 = vld [vmem:[%s868_s5 + $0x80] sm:$0xff] }
  0x13   :  { %471 = vmatpush3.msra.mxu0 %v49_v21  ;;  %141 = vmatprep.mubr.f32.mxu0 %v75_v23  ;;  %v42_v36 = vld [vmem:[%s868_s5] sm:$0xff]  ;;  %v160_v46 = vld [vmem:[%s869_s6 + $0x8] sm:$0xff]  ;;  %v273_v49 = vld [vmem:[%s870_s7 + $0xf8] sm:$0xff] }
  0x14   :  { %472 = vmatprep.subr.mxu0 %v64_v22  ;;  %v159_v47 = vld [vmem:[%s869_s6] sm:$0xff]  ;;  %195 = vmatprep.subr.mxu1 %v160_v46  ;;  %v257_v53 = vld [vmem:[%s870_s7 + $0x78] sm:$0xff]  ;;  %v272_v54 = vld [vmem:[%s870_s7 + $0xf0] sm:$0xff] }
  0x15   :  { %473 = vmatpush3.msra.mxu0 %v48_v24  ;;  %196 = vmatpush1.msra.mxu1 %v159_v47  ;;  %v256_v55 = vld [vmem:[%s870_s7 + $0x70] sm:$0xff]  ;;  %v271_v56 = vld [vmem:[%s870_s7 + $0xe8] sm:$0xff]  ;;  %v270_v58 = vld [vmem:[%s870_s7 + $0xe0] sm:$0xff] }
  0x16   :  { %474 = vmatprep.subr.mxu0 %v63_v25  ;;  %489 = vmatprep.subr.mxu1 %v273_v49  ;;  %v255_v57 = vld [vmem:[%s870_s7 + $0x68] sm:$0xff]  ;;  %v254_v59 = vld [vmem:[%s870_s7 + $0x60] sm:$0xff]  ;;  %v269_v60 = vld [vmem:[%s870_s7 + $0xd8] sm:$0xff] }
  0x17   :  { %475 = vmatpush3.msra.mxu0 %v47_v26  ;;  %v253_v61 = vld [vmem:[%s870_s7 + $0x58] sm:$0xff]  ;;  %v268_v62 = vld [vmem:[%s870_s7 + $0xd0] sm:$0xff]  ;;  %v267_v0 = vld [vmem:[%s870_s7 + $0xc8] sm:$0xff] }
  0x18   :  { %476 = vmatprep.subr.mxu0 %v62_v27  ;;  %v252_v63 = vld [vmem:[%s870_s7 + $0x50] sm:$0xff]  ;;  %v251_v1 = vld [vmem:[%s870_s7 + $0x48] sm:$0xff]  ;;  %v266_v2 = vld [vmem:[%s870_s7 + $0xc0] sm:$0xff] }
  0x19   :  { %477 = vmatpush3.msra.mxu0 %v46_v28  ;;  %v250_v3 = vld [vmem:[%s870_s7 + $0x40] sm:$0xff]  ;;  %v265_v4 = vld [vmem:[%s870_s7 + $0xb8] sm:$0xff]  ;;  %v264_v6 = vld [vmem:[%s870_s7 + $0xb0] sm:$0xff] }
  0x1a   :  { %478 = vmatprep.subr.mxu0 %v61_v29  ;;  %v249_v5 = vld [vmem:[%s870_s7 + $0x38] sm:$0xff]  ;;  %v248_v7 = vld [vmem:[%s870_s7 + $0x30] sm:$0xff]  ;;  %v263_v8 = vld [vmem:[%s870_s7 + $0xa8] sm:$0xff] }
  0x1b   :  { %479 = vmatpush3.msra.mxu0 %v45_v30  ;;  %v247_v9 = vld [vmem:[%s870_s7 + $0x28] sm:$0xff]  ;;  %v262_v10 = vld [vmem:[%s870_s7 + $0xa0] sm:$0xff]  ;;  %v261_v12 = vld [vmem:[%s870_s7 + $0x98] sm:$0xff] }
  0x1c   :  { %480 = vmatprep.subr.mxu0 %v60_v31  ;;  %v246_v11 = vld [vmem:[%s870_s7 + $0x20] sm:$0xff]  ;;  %v245_v13 = vld [vmem:[%s870_s7 + $0x18] sm:$0xff]  ;;  %v260_v14 = vld [vmem:[%s870_s7 + $0x90] sm:$0xff] }
  0x1d   :  { %481 = vmatpush3.msra.mxu0 %v44_v32  ;;  %v244_v15 = vld [vmem:[%s870_s7 + $0x10] sm:$0xff]  ;;  %v259_v16 = vld [vmem:[%s870_s7 + $0x88] sm:$0xff]  ;;  %v258_v18 = vld [vmem:[%s870_s7 + $0x80] sm:$0xff] }
  0x1e   :  { %482 = vmatprep.subr.mxu0 %v59_v33  ;;  %v243_v17 = vld [vmem:[%s870_s7 + $0x8] sm:$0xff]  ;;  %v242_v19 = vld [vmem:[%s870_s7] sm:$0xff]  ;;  %v352_v26 = vld [vmem:[%s871_s8 + $0x18] sm:$0xff] }
  0x1f   :  { %483 = vmatpush3.msra.mxu0 %v43_v34  ;;  %v236_v22 = vld [vmem:[%s864_s1] sm:$0xff]  ;;  %v351_v27 = vld [vmem:[%s871_s8 + $0x10] sm:$0xff]  ;;  %v350_v28 = vld [vmem:[%s871_s8 + $0x8] sm:$0xff] }
  0x20   :  { %484 = vmatprep.subr.mxu0 %v58_v35  ;;  %v349_v29 = vld [vmem:[%s871_s8] sm:$0xff]  ;;  %s573_s8 = smov [#allocation3]  }
  0x21   :  { %485 = vmatpush3.msra.mxu0 %v42_v36  ;;  %v347_v32 = vld [vmem:[%s863_s0] sm:$0xf]  ;;  %s443_s17 = sshll.u32 %s573_s8, 4  ;;  %s444_s17 = int_to_ptr.vmem [resolvable:$true] %s443_s17 }
  0x22   :  { %142 = vmatmul.mubr.f32.vlgmr.msra.gmra.mxu0 %v41_v20  ;;  %529 = vmatprep.subr.mxu0 %v571_v48  ;;  %v452_v35 = vld [vmem:[%s872_s9] ss:$0 sm:$0xff]  ;;  %s549_s18 = scalar_lea.vmem %s444_s17, 64  ;;  %p554_p1 = scmp.lt.s32.totalorder %s444_s17, %s444_s17 }
  0x23   :  { %530 = vmatpush3.msra.mxu0 %v352_v26  ;;  %537 = vmatprep.mubr.msk.f32.mxu0 %vm572_vm2, %v571_v48  ;;  %p550_p0 = scmp.ne.s32.totalorder %s444_s17, %s549_s18  ;;  %p555_p2 = scmp.lt.s32.totalorder %s549_s18, %s549_s18 }
  0x24   :  { %531 = vmatprep.subr.mxu0 %v571_v48 }
  0x25   :  { %532 = vmatpush3.msra.mxu0 %v351_v27  ;;  %p556_p3 = por %p555_p2, %p554_p1 }
  0x26   :  { %533 = vmatprep.subr.mxu0 %v571_v48 }
  0x27   :  { %534 = vmatpush3.msra.mxu0 %v350_v28  ;;  %p557_p4 = pnand %p556_p3, %p550_p0 }
  0x28   :  { %535 = vmatprep.subr.mxu0 %v571_v48 }
  0x29   :  { %536 = vmatpush3.msra.mxu0 %v349_v29 }
  0xe2   :  { %v486_v37 = vpop.f32.mrf.mxu0 }
  0xe4   :  { %v487_v38 = vpop.f32.mrf.mxu0 }
  0xe5   :  { %v488_v39 = vadd.f32 %v487_v38, %v486_v37 }
  0xe7   :  { %v148_v40 = vsel %vm147_vm0, %v488_v39, -inf }
  0xe8   :  { %149 = vmax.xlane.f32.xlu0 %v148_v40 }
 0x171   :  { %v150_v41 = vpop.xlane.xlu0 %149 }
 0x172   :  { %v151_v42 = vsub.f32 %v488_v39, %v150_v41 }
 0x174   :  { %v152_v43 = vmul.f32 1.442695, %v151_v42 }
 0x176   :  { %543 = vpow2.f32 %v152_v43 }
 0x183   :  { %v544_v44 = vpop.eup %543 }
 0x184   :  { %v154_v45 = vsel %vm147_vm0, %v544_v44, 0.0 }
 0x185   :  { %155 = vadd.xlane.f32.xlu0 %v154_v45 }
 0x20e   :  { %v156_v50 = vpop.xlane.xlu0 %155 }
 0x20f   :  { %545 = vrcp.f32 %v156_v50 }
 0x21c   :  { %v546_v51 = vpop.eup %545 }
 0x21d   :  { %v158_v52 = vmul.f32 %v546_v51, %v544_v44 }
 0x21f   :  { %451 = vmatmul.mubr.msk.f32.vlgmr.msra.gmra.mxu1 %vm161_vm1, %v158_v52 }
 0x220   :  { %490 = vmatpush3.msra.mxu1 %v257_v53 }
 0x221   :  { %491 = vmatprep.subr.mxu1 %v272_v54 }
 0x222   :  { %492 = vmatpush3.msra.mxu1 %v256_v55 }
 0x223   :  { %493 = vmatprep.subr.mxu1 %v271_v56 }
 0x224   :  { %494 = vmatpush3.msra.mxu1 %v255_v57 }
 0x225   :  { %495 = vmatprep.subr.mxu1 %v270_v58 }
 0x226   :  { %496 = vmatpush3.msra.mxu1 %v254_v59 }
 0x227   :  { %497 = vmatprep.subr.mxu1 %v269_v60 }
 0x228   :  { %498 = vmatpush3.msra.mxu1 %v253_v61 }
 0x229   :  { %499 = vmatprep.subr.mxu1 %v268_v62 }
 0x22a   :  { %500 = vmatpush3.msra.mxu1 %v252_v63 }
 0x22b   :  { %501 = vmatprep.subr.mxu1 %v267_v0 }
 0x22c   :  { %502 = vmatpush3.msra.mxu1 %v251_v1 }
 0x22d   :  { %503 = vmatprep.subr.mxu1 %v266_v2 }
 0x22e   :  { %504 = vmatpush3.msra.mxu1 %v250_v3 }
 0x22f   :  { %505 = vmatprep.subr.mxu1 %v265_v4 }
 0x230   :  { %506 = vmatpush3.msra.mxu1 %v249_v5 }
 0x231   :  { %507 = vmatprep.subr.mxu1 %v264_v6 }
 0x232   :  { %508 = vmatpush3.msra.mxu1 %v248_v7 }
 0x233   :  { %509 = vmatprep.subr.mxu1 %v263_v8 }
 0x234   :  { %510 = vmatpush3.msra.mxu1 %v247_v9 }
 0x235   :  { %511 = vmatprep.subr.mxu1 %v262_v10 }
 0x236   :  { %512 = vmatpush3.msra.mxu1 %v246_v11 }
 0x237   :  { %513 = vmatprep.subr.mxu1 %v261_v12 }
 0x238   :  { %514 = vmatpush3.msra.mxu1 %v245_v13 }
 0x239   :  { %515 = vmatprep.subr.mxu1 %v260_v14 }
 0x23a   :  { %516 = vmatpush3.msra.mxu1 %v244_v15 }
 0x23b   :  { %517 = vmatprep.subr.mxu1 %v259_v16 }
 0x23c   :  { %518 = vmatpush3.msra.mxu1 %v243_v17 }
 0x23d   :  { %519 = vmatprep.subr.mxu1 %v258_v18 }
 0x23e   :  { %520 = vmatpush3.msra.mxu1 %v242_v19 }
 0x2df   :  { %v231_v20 = vpop.f32.mrf.mxu1 }
 0x2e1   :  { %v233_v21 = vpop.f32.mrf.mxu1 }
 0x2e2   :  { %v239_v23 = vcombine.low %v231_v20, %v233_v21 }
 0x2e4   :  { %v241_v24 = vmul.f32 %v239_v23, %v236_v22 }
 0x2e6   :  { %v275_v25 = vcombine.high %v241_v24, %v241_v24 }
 0x2e8   :  { %341 = vmatprep.mubr.f32.mxu1 %v275_v25 }
 0x2e9   :  { %342 = vmatmul.mubr.f32.vlgmr.msra.gmra.mxu1 %v241_v24 }
 0x3a9   :  { %v521_v30 = vpop.f32.mrf.mxu1 }
 0x3ab   :  { %v522_v31 = vpop.f32.mrf.mxu1 }
 0x3ac   :  { %v523_v33 = vadd.f32 %v522_v31, %v521_v30 }
 0x3ae   :  { %v348_v34 = vadd.f32 %v523_v33, %v347_v32 }
 0x3b0   :  { %538 = vmatmul.mubr.msk.f32.vlgmr.msra.gmra.mxu0 %vm360_vm3, %v348_v34 }
 0x470   :  { %v430_v36 = vpop.f32.mrf.mxu0 }
 0x471   :  { %v431_v37 = vadd.f32 %v452_v35, %v430_v36 }
 0x472   :  { %v539_v38 = vpop.f32.mrf.mxu0 }
 0x473   :  { %547 = vtanh.f32 %v431_v37 }
 0x480   :  { %v548_v39 = vpop.eup %547 }
 0x481   :  { %436 = vst.msk [vmem:[#allocation3] sm:$0xf] %vm435_vm4, %v548_v39 }
 0x482   :  { %560 = shalt.err (!%p557_p4)
}
 0x483   :  { %446 = dma.vmem_to_hbm [thread:$0]  %s444_s17, 64, %s873_s10, [#allocation4]  }
 0x484   :  { %569 = dma.done.wait [#allocation4], 64  }
 0x485   :  { %570 = vsyncadd [#allocation4], 4294967232 }
 0x486   :  { %450 = vsyncpa [#allocation4], 1 }

</bundles_post_ra>
